<compile_context>
chip_gen: v5e
topology: v5e:2x2
jax: 0.10.0
libtpu: 0.0.40
codegen_flags: <defaults>
</compile_context>

<pallas_src>
import jax
import jax.numpy as jnp
from jax import lax
from jax.experimental import pallas as pl
from jax.experimental.pallas import tpu as pltpu

# ---- small synthetic BERT config -------------------------------------------
VOCAB = 100
MAX_POS = 64
HIDDEN = 32
NUM_HEADS = 2
HEAD_DIM = HIDDEN // NUM_HEADS
INTERMEDIATE = 64
NUM_LAYERS = 2
LN_EPS = 1e-12          # BERT default
POS_ROW_OFFSET = 8      # pos rows start tile-aligned: rows [0]=ln_g, [1]=ln_b, [2:8]=pad


# ---- in-kernel math helpers -------------------------------------------------
def _layernorm(x, gamma, beta):
    mu = jnp.mean(x, axis=-1, keepdims=True)
    var = jnp.mean(jnp.square(x - mu), axis=-1, keepdims=True)
    return (x - mu) * lax.rsqrt(var + LN_EPS) * gamma + beta


def _erf_f32(x):
    # Abramowitz & Stegun 7.1.26 rational approximation, |error| < 1.5e-7.
    a1, a2, a3, a4, a5 = (0.254829592, -0.284496736, 1.421413741,
                          -1.453152027, 1.061405429)
    p = 0.3275911
    sgn = jnp.where(x >= 0.0, 1.0, -1.0)
    ax = jnp.abs(x)
    t = 1.0 / (1.0 + p * ax)
    poly = ((((a5 * t + a4) * t + a3) * t + a2) * t + a1) * t
    return sgn * (1.0 - poly * jnp.exp(-ax * ax))


def _gelu_erf(x):
    # Exact (erf) GELU, matching HF BERT's default activation.
    return x * 0.5 * (1.0 + _erf_f32(x * 0.7071067811865476))


# ---- fused encoder kernel ----------------------------------------------------
# grid = (B, NUM_LAYERS); args: scalar-prefetch ids, then blocked inputs, out, scratch.
def bert_encoder_kernel(ids_ref,            # SMEM (B, S) int32 (scalar prefetch)
                        mask_ref,           # (1, S) int32
                        word_emb_ref,       # (VOCAB, H) f32
                        emb_const_ref,      # (16, H) f32: [ln_g, ln_b, pad.., pos+type0]
                        w_att_ref,          # (3*NH, H, HD) bf16  [q heads | k heads | v heads]
                        b_att_ref,          # (3*NH, 1, HD) f32
                        w_o_ref,            # (NH, HD, H) bf16
                        w_ff1_ref,          # (H, I) bf16
                        w_ff2_ref,          # (I, H) bf16
                        b_ff1_ref,          # (1, I) f32
                        vecs_ref,           # (6, H) f32: [b_o, b_ff2, ln1_g, ln1_b, ln2_g, ln2_b]
                        o_ref,              # (1, H) f32  (CLS row)
                        x_sc):              # VMEM scratch (S, H) f32, carried across layers
    S, H = x_sc.shape
    NH, HD = NUM_HEADS, HEAD_DIM
    scale = 1.0 / (HD ** 0.5)

    b = pl.program_id(0)
    l = pl.program_id(1)

    # ---- embeddings (word gather + pos/type add + LN), only at layer 0 -------
    @pl.when(l == 0)
    def _embed():
        for s in range(S):                              # small static unroll
            tok = ids_ref[b, s]                         # scalar from SMEM
            x_sc[pl.ds(s, 1), :] = (
                word_emb_ref[pl.ds(tok, 1), :]
                + emb_const_ref[pl.ds(POS_ROW_OFFSET + s, 1), :])
        x_sc[...] = _layernorm(x_sc[...],
                               emb_const_ref[0:1, :], emb_const_ref[1:2, :])

    # ---- one transformer layer on this batch's (S, H) activation -------------
    x = x_sc[...]                                       # (S, H) f32
    x_bf = x.astype(jnp.bfloat16)                       # cast once, reused for Q/K/V

    add_mask = (1.0 - mask_ref[...].astype(jnp.float32)) * (-1e9)   # (1, S)

    acc = jnp.zeros((S, H), jnp.float32)
    for h in range(NH):                                 # NH=2, static unroll
        q = jnp.dot(x_bf, w_att_ref[0 * NH + h],
                    preferred_element_type=jnp.float32) + b_att_ref[0 * NH + h]
        k = jnp.dot(x_bf, w_att_ref[1 * NH + h],
                    preferred_element_type=jnp.float32) + b_att_ref[1 * NH + h]
        v = jnp.dot(x_bf, w_att_ref[2 * NH + h],
                    preferred_element_type=jnp.float32) + b_att_ref[2 * NH + h]

        s_h = lax.dot_general(q.astype(jnp.bfloat16), k.astype(jnp.bfloat16),
                              (((1,), (1,)), ((), ())),
                              preferred_element_type=jnp.float32) * scale   # (S, S)
        s_h = s_h + add_mask
        s_h = s_h - jnp.max(s_h, axis=-1, keepdims=True)
        p = jnp.exp(s_h)
        p = p * pl.reciprocal(jnp.sum(p, axis=-1, keepdims=True), approx=True)

        ctx = jnp.dot(p.astype(jnp.bfloat16), v.astype(jnp.bfloat16),
                      preferred_element_type=jnp.float32)                   # (S, HD)
        acc = acc + jnp.dot(ctx.astype(jnp.bfloat16), w_o_ref[h],
                            preferred_element_type=jnp.float32)             # (S, H)

    attn_out = acc + vecs_ref[0:1, :]                                       # + b_o
    h1 = _layernorm(x + attn_out, vecs_ref[2:3, :], vecs_ref[3:4, :])

    h1_bf = h1.astype(jnp.bfloat16)                     # cast once, reused for FFN
    ff = jnp.dot(h1_bf, w_ff1_ref[...], preferred_element_type=jnp.float32)
    ff = _gelu_erf(ff + b_ff1_ref[...])
    ff = jnp.dot(ff.astype(jnp.bfloat16), w_ff2_ref[...],
                 preferred_element_type=jnp.float32) + vecs_ref[1:2, :]     # + b_ff2
    x_new = _layernorm(h1 + ff, vecs_ref[4:5, :], vecs_ref[5:6, :])
    x_sc[...] = x_new

    # ---- CLS token (last_hidden_state[:, 0, :]) after the last layer ---------
    @pl.when(l == pl.num_programs(1) - 1)
    def _write_cls():
        o_ref[...] = x_new[0:1, :].astype(o_ref.dtype)


# ---- wrapper -----------------------------------------------------------------
def text_encoder_forward(params, input_ids, attention_mask):
    B, S = input_ids.shape
    H, I, NH, HD, L = HIDDEN, INTERMEDIATE, NUM_HEADS, HEAD_DIM, NUM_LAYERS
    assert S <= MAX_POS

    ids = input_ids.astype(jnp.int32)
    mask3 = attention_mask.reshape(B, 1, S).astype(jnp.int32)

    emb_rows_blk = POS_ROW_OFFSET + ((S + 7) // 8) * 8   # tile-aligned rows actually needed

    grid_spec = pltpu.PrefetchScalarGridSpec(
        num_scalar_prefetch=1,            # input_ids -> SMEM, fused in-kernel gather
        grid=(B, L),
        in_specs=[
            pl.BlockSpec((None, 1, S), lambda b, l, ids: (b, 0, 0)),           # mask
            pl.BlockSpec((VOCAB, H), lambda b, l, ids: (0, 0)),                # word_emb
            pl.BlockSpec((emb_rows_blk, H), lambda b, l, ids: (0, 0)),         # emb_const
            pl.BlockSpec((None, 3 * NH, H, HD), lambda b, l, ids: (l, 0, 0, 0)),  # w_att
            pl.BlockSpec((None, 3 * NH, 1, HD), lambda b, l, ids: (l, 0, 0, 0)),  # b_att
            pl.BlockSpec((None, NH, HD, H), lambda b, l, ids: (l, 0, 0, 0)),      # w_o
            pl.BlockSpec((None, H, I), lambda b, l, ids: (l, 0, 0)),              # w_ff1
            pl.BlockSpec((None, I, H), lambda b, l, ids: (l, 0, 0)),              # w_ff2
            pl.BlockSpec((None, 1, I), lambda b, l, ids: (l, 0, 0)),              # b_ff1
            pl.BlockSpec((None, 6, H), lambda b, l, ids: (l, 0, 0)),              # vecs
        ],
        out_specs=pl.BlockSpec((None, 1, H), lambda b, l, ids: (b, 0, 0)),
        scratch_shapes=[pltpu.VMEM((S, H), jnp.float32)],
    )

    out = pl.pallas_call(
        bert_encoder_kernel,
        out_shape=jax.ShapeDtypeStruct((B, 1, H), jnp.float32),
        grid_spec=grid_spec,
        compiler_params=pltpu.CompilerParams(
            dimension_semantics=("parallel", "arbitrary"),
            vmem_limit_bytes=32 * 1024 * 1024,
        ),
    )(ids, mask3,
      params['word_emb'], params['emb_const'],
      params['w_att'], params['b_att'], params['w_o'],
      params['w_ff1'], params['w_ff2'], params['b_ff1'], params['vecs'])
    return out.reshape(B, H)


# ---- deterministic parameter init (lane-aligned, per-head packed layout) -----
def init_params(key):
    def nrm(k, shape, scale=0.02):
        return (scale * jax.random.normal(k, shape)).astype(jnp.float32)

    H, I, NH, HD = HIDDEN, INTERMEDIATE, NUM_HEADS, HEAD_DIM
    kw, kp, kt, kl = jax.random.split(key, 4)
    layer_keys = jax.random.split(kl, NUM_LAYERS)

    def per_head_cols(w):           # (H, H) -> (NH, H, HD): head axis leading
        return w.reshape(H, NH, HD).transpose(1, 0, 2)

    w_att, b_att, w_o, w_ff1, w_ff2, b_ff1, vecs = [], [], [], [], [], [], []
    for li in range(NUM_LAYERS):
        k0, k1, k2, k3, k4, k5 = jax.random.split(layer_keys[li], 6)
        wq, wk, wv, wo = (nrm(k0, (H, H)), nrm(k1, (H, H)),
                          nrm(k2, (H, H)), nrm(k3, (H, H)))
        w_att.append(jnp.concatenate(
            [per_head_cols(wq), per_head_cols(wk), per_head_cols(wv)], axis=0))  # (3NH,H,HD)
        b_att.append(jnp.zeros((3 * NH, 1, HD), jnp.float32))
        w_o.append(wo.reshape(NH, HD, H))                                        # (NH,HD,H)
        w_ff1.append(nrm(k4, (H, I)))
        w_ff2.append(nrm(k5, (I, H)))
        b_ff1.append(jnp.zeros((1, I), jnp.float32))
        vecs.append(jnp.stack([jnp.zeros(H),                 # b_o
                               jnp.zeros(H),                 # b_ff2
                               jnp.ones(H), jnp.zeros(H),    # ln1 gamma / beta
                               jnp.ones(H), jnp.zeros(H)     # ln2 gamma / beta
                               ]).astype(jnp.float32))        # (6, H)

    pos = nrm(kp, (MAX_POS, H))
    type0 = nrm(kt, (2, H))[0:1]      # token_type_ids are always 0 in this forward
    emb_const = jnp.concatenate(
        [jnp.ones((1, H), jnp.float32),                  # embedding LN gamma
         jnp.zeros((1, H), jnp.float32),                 # embedding LN beta
         jnp.zeros((POS_ROW_OFFSET - 2, H), jnp.float32),
         (pos + type0).astype(jnp.float32)], axis=0)     # (8 + MAX_POS, H)

    return {
        'word_emb': nrm(kw, (VOCAB, H)),
        'emb_const': emb_const,
        'w_att': jnp.stack(w_att).astype(jnp.bfloat16),   # (L, 3*NH, H, HD)
        'b_att': jnp.stack(b_att),                        # (L, 3*NH, 1, HD)
        'w_o': jnp.stack(w_o).astype(jnp.bfloat16),       # (L, NH, HD, H)
        'w_ff1': jnp.stack(w_ff1).astype(jnp.bfloat16),   # (L, H, I)
        'w_ff2': jnp.stack(w_ff2).astype(jnp.bfloat16),   # (L, I, H)
        'b_ff1': jnp.stack(b_ff1),                        # (L, 1, I)
        'vecs': jnp.stack(vecs),                          # (L, 6, H)
    }


if __name__ == "__main__":
    key = jax.random.PRNGKey(0)
    pkey, ikey = jax.random.split(key)
    params = init_params(pkey)

    B, S = 2, 8
    input_ids = jax.random.randint(ikey, (B, S), 0, VOCAB, dtype=jnp.int32)
    attention_mask = jnp.array([[1, 1, 1, 1, 1, 1, 1, 1],
                                [1, 1, 1, 1, 1, 0, 0, 0]], dtype=jnp.int32)

    fwd = jax.jit(text_encoder_forward)
    out = jax.block_until_ready(fwd(params, input_ids, attention_mask))
    assert out.shape == (B, HIDDEN)
    assert bool(jnp.all(jnp.isfinite(out)))
    print("KERNEL_OK")
</pallas_src>

<mosaic_0001>
module attributes {stable_mosaic.version = 11 : i64} {
  func.func @bert_encoder_kernel(%arg0: i32, %arg1: i32, %arg2: memref<2x8xi32, #tpu.memory_space<smem>>, %arg3: memref<1x1x8xi32, #tpu.memory_space<vmem>>, %arg4: memref<100x32xf32, #tpu.memory_space<vmem>>, %arg5: memref<16x32xf32, #tpu.memory_space<vmem>>, %arg6: memref<1x6x32x16xbf16, #tpu.memory_space<vmem>>, %arg7: memref<1x6x1x16xf32, #tpu.memory_space<vmem>>, %arg8: memref<1x2x16x32xbf16, #tpu.memory_space<vmem>>, %arg9: memref<1x32x64xbf16, #tpu.memory_space<vmem>>, %arg10: memref<1x64x32xbf16, #tpu.memory_space<vmem>>, %arg11: memref<1x1x64xf32, #tpu.memory_space<vmem>>, %arg12: memref<1x6x32xf32, #tpu.memory_space<vmem>>, %arg13: memref<1x1x32xf32, #tpu.memory_space<vmem>>, %arg14: memref<8x32xf32, #tpu.memory_space<vmem>>) attributes {dimension_semantics = [#tpu.dimension_semantics<parallel>, #tpu.dimension_semantics<arbitrary>], iteration_bounds = array<i64: 2, 2>, scalar_prefetch = 1 : i64, scratch_operands = 1 : i64, tpu.core_type = #tpu.core_type<tc>, window_params = [{transform_indices = @transform_0, window_bounds = array<i64: 1, 1, 8>}, {pipeline_mode = #tpu.pipeline_mode<synchronous>, transform_indices = @transform_1, window_bounds = array<i64: 100, 32>}, {transform_indices = @transform_2, window_bounds = array<i64: 16, 32>}, {transform_indices = @transform_3, window_bounds = array<i64: 1, 6, 32, 16>}, {transform_indices = @transform_4, window_bounds = array<i64: 1, 6, 1, 16>}, {transform_indices = @transform_5, window_bounds = array<i64: 1, 2, 16, 32>}, {transform_indices = @transform_6, window_bounds = array<i64: 1, 32, 64>}, {transform_indices = @transform_7, window_bounds = array<i64: 1, 64, 32>}, {transform_indices = @transform_8, window_bounds = array<i64: 1, 1, 64>}, {transform_indices = @transform_9, window_bounds = array<i64: 1, 6, 32>}, {transform_indices = @transform_10, window_bounds = array<i64: 1, 1, 32>}]} {
    %c0_i32 = arith.constant 0 : i32
    %0 = arith.cmpi eq, %arg1, %c0_i32 : i32
    %1 = arith.extui %0 : i1 to i32
    %c0_i32_0 = arith.constant 0 : i32
    %2 = arith.cmpi ne, %1, %c0_i32_0 : i32
    scf.if %2 {
      %224 = arith.index_cast %arg0 : i32 to index
      %c0_134 = arith.constant 0 : index
      %225 = memref.load %arg2[%224, %c0_134] : memref<2x8xi32, #tpu.memory_space<smem>>
      %226 = arith.index_cast %225 : i32 to index
      %c0_135 = arith.constant 0 : index
      %227 = vector.load %arg4[%226, %c0_135] : memref<100x32xf32, #tpu.memory_space<vmem>>, vector<1x32xf32>
      %c8 = arith.constant 8 : index
      %c0_136 = arith.constant 0 : index
      %228 = vector.load %arg5[%c8, %c0_136] : memref<16x32xf32, #tpu.memory_space<vmem>>, vector<1x32xf32>
      %229 = arith.addf %227, %228 : vector<1x32xf32>
      %c0_137 = arith.constant 0 : index
      %c0_138 = arith.constant 0 : index
      %230 = vector.load %arg14[%c0_137, %c0_138] : memref<8x32xf32, #tpu.memory_space<vmem>>, vector<1x32xf32>
      tpu.vector_store %arg14[%c0_137, %c0_138], %229 {strides = array<i32>} : memref<8x32xf32, #tpu.memory_space<vmem>>, vector<1x32xf32>,
      %231 = arith.index_cast %arg0 : i32 to index
      %c1_139 = arith.constant 1 : index
      %232 = memref.load %arg2[%231, %c1_139] : memref<2x8xi32, #tpu.memory_space<smem>>
      %233 = arith.index_cast %232 : i32 to index
      %c0_140 = arith.constant 0 : index
      %234 = vector.load %arg4[%233, %c0_140] : memref<100x32xf32, #tpu.memory_space<vmem>>, vector<1x32xf32>
      %c9 = arith.constant 9 : index
      %c0_141 = arith.constant 0 : index
      %235 = vector.load %arg5[%c9, %c0_141] : memref<16x32xf32, #tpu.memory_space<vmem>>, vector<1x32xf32>
      %236 = arith.addf %234, %235 : vector<1x32xf32>
      %c1_142 = arith.constant 1 : index
      %c0_143 = arith.constant 0 : index
      %237 = vector.load %arg14[%c1_142, %c0_143] : memref<8x32xf32, #tpu.memory_space<vmem>>, vector<1x32xf32>
      tpu.vector_store %arg14[%c1_142, %c0_143], %236 {strides = array<i32>} : memref<8x32xf32, #tpu.memory_space<vmem>>, vector<1x32xf32>,
      %238 = arith.index_cast %arg0 : i32 to index
      %c2_144 = arith.constant 2 : index
      %239 = memref.load %arg2[%238, %c2_144] : memref<2x8xi32, #tpu.memory_space<smem>>
      %240 = arith.index_cast %239 : i32 to index
      %c0_145 = arith.constant 0 : index
      %241 = vector.load %arg4[%240, %c0_145] : memref<100x32xf32, #tpu.memory_space<vmem>>, vector<1x32xf32>
      %c10 = arith.constant 10 : index
      %c0_146 = arith.constant 0 : index
      %242 = vector.load %arg5[%c10, %c0_146] : memref<16x32xf32, #tpu.memory_space<vmem>>, vector<1x32xf32>
      %243 = arith.addf %241, %242 : vector<1x32xf32>
      %c2_147 = arith.constant 2 : index
      %c0_148 = arith.constant 0 : index
      %244 = vector.load %arg14[%c2_147, %c0_148] : memref<8x32xf32, #tpu.memory_space<vmem>>, vector<1x32xf32>
      tpu.vector_store %arg14[%c2_147, %c0_148], %243 {strides = array<i32>} : memref<8x32xf32, #tpu.memory_space<vmem>>, vector<1x32xf32>,
      %245 = arith.index_cast %arg0 : i32 to index
      %c3_149 = arith.constant 3 : index
      %246 = memref.load %arg2[%245, %c3_149] : memref<2x8xi32, #tpu.memory_space<smem>>
      %247 = arith.index_cast %246 : i32 to index
      %c0_150 = arith.constant 0 : index
      %248 = vector.load %arg4[%247, %c0_150] : memref<100x32xf32, #tpu.memory_space<vmem>>, vector<1x32xf32>
      %c11 = arith.constant 11 : index
      %c0_151 = arith.constant 0 : index
      %249 = vector.load %arg5[%c11, %c0_151] : memref<16x32xf32, #tpu.memory_space<vmem>>, vector<1x32xf32>
      %250 = arith.addf %248, %249 : vector<1x32xf32>
      %c3_152 = arith.constant 3 : index
      %c0_153 = arith.constant 0 : index
      %251 = vector.load %arg14[%c3_152, %c0_153] : memref<8x32xf32, #tpu.memory_space<vmem>>, vector<1x32xf32>
      tpu.vector_store %arg14[%c3_152, %c0_153], %250 {strides = array<i32>} : memref<8x32xf32, #tpu.memory_space<vmem>>, vector<1x32xf32>,
      %252 = arith.index_cast %arg0 : i32 to index
      %c4_154 = arith.constant 4 : index
      %253 = memref.load %arg2[%252, %c4_154] : memref<2x8xi32, #tpu.memory_space<smem>>
      %254 = arith.index_cast %253 : i32 to index
      %c0_155 = arith.constant 0 : index
      %255 = vector.load %arg4[%254, %c0_155] : memref<100x32xf32, #tpu.memory_space<vmem>>, vector<1x32xf32>
      %c12 = arith.constant 12 : index
      %c0_156 = arith.constant 0 : index
      %256 = vector.load %arg5[%c12, %c0_156] : memref<16x32xf32, #tpu.memory_space<vmem>>, vector<1x32xf32>
      %257 = arith.addf %255, %256 : vector<1x32xf32>
      %c4_157 = arith.constant 4 : index
      %c0_158 = arith.constant 0 : index
      %258 = vector.load %arg14[%c4_157, %c0_158] : memref<8x32xf32, #tpu.memory_space<vmem>>, vector<1x32xf32>
      tpu.vector_store %arg14[%c4_157, %c0_158], %257 {strides = array<i32>} : memref<8x32xf32, #tpu.memory_space<vmem>>, vector<1x32xf32>,
      %259 = arith.index_cast %arg0 : i32 to index
      %c5_159 = arith.constant 5 : index
      %260 = memref.load %arg2[%259, %c5_159] : memref<2x8xi32, #tpu.memory_space<smem>>
      %261 = arith.index_cast %260 : i32 to index
      %c0_160 = arith.constant 0 : index
      %262 = vector.load %arg4[%261, %c0_160] : memref<100x32xf32, #tpu.memory_space<vmem>>, vector<1x32xf32>
      %c13 = arith.constant 13 : index
      %c0_161 = arith.constant 0 : index
      %263 = vector.load %arg5[%c13, %c0_161] : memref<16x32xf32, #tpu.memory_space<vmem>>, vector<1x32xf32>
      %264 = arith.addf %262, %263 : vector<1x32xf32>
      %c5_162 = arith.constant 5 : index
      %c0_163 = arith.constant 0 : index
      %265 = vector.load %arg14[%c5_162, %c0_163] : memref<8x32xf32, #tpu.memory_space<vmem>>, vector<1x32xf32>
      tpu.vector_store %arg14[%c5_162, %c0_163], %264 {strides = array<i32>} : memref<8x32xf32, #tpu.memory_space<vmem>>, vector<1x32xf32>,
      %266 = arith.index_cast %arg0 : i32 to index
      %c6 = arith.constant 6 : index
      %267 = memref.load %arg2[%266, %c6] : memref<2x8xi32, #tpu.memory_space<smem>>
      %268 = arith.index_cast %267 : i32 to index
      %c0_164 = arith.constant 0 : index
      %269 = vector.load %arg4[%268, %c0_164] : memref<100x32xf32, #tpu.memory_space<vmem>>, vector<1x32xf32>
      %c14 = arith.constant 14 : index
      %c0_165 = arith.constant 0 : index
      %270 = vector.load %arg5[%c14, %c0_165] : memref<16x32xf32, #tpu.memory_space<vmem>>, vector<1x32xf32>
      %271 = arith.addf %269, %270 : vector<1x32xf32>
      %c6_166 = arith.constant 6 : index
      %c0_167 = arith.constant 0 : index
      %272 = vector.load %arg14[%c6_166, %c0_167] : memref<8x32xf32, #tpu.memory_space<vmem>>, vector<1x32xf32>
      tpu.vector_store %arg14[%c6_166, %c0_167], %271 {strides = array<i32>} : memref<8x32xf32, #tpu.memory_space<vmem>>, vector<1x32xf32>,
      %273 = arith.index_cast %arg0 : i32 to index
      %c7 = arith.constant 7 : index
      %274 = memref.load %arg2[%273, %c7] : memref<2x8xi32, #tpu.memory_space<smem>>
      %275 = arith.index_cast %274 : i32 to index
      %c0_168 = arith.constant 0 : index
      %276 = vector.load %arg4[%275, %c0_168] : memref<100x32xf32, #tpu.memory_space<vmem>>, vector<1x32xf32>
      %c15 = arith.constant 15 : index
      %c0_169 = arith.constant 0 : index
      %277 = vector.load %arg5[%c15, %c0_169] : memref<16x32xf32, #tpu.memory_space<vmem>>, vector<1x32xf32>
      %278 = arith.addf %276, %277 : vector<1x32xf32>
      %c7_170 = arith.constant 7 : index
      %c0_171 = arith.constant 0 : index
      %279 = vector.load %arg14[%c7_170, %c0_171] : memref<8x32xf32, #tpu.memory_space<vmem>>, vector<1x32xf32>
      tpu.vector_store %arg14[%c7_170, %c0_171], %278 {strides = array<i32>} : memref<8x32xf32, #tpu.memory_space<vmem>>, vector<1x32xf32>,
      %c0_172 = arith.constant 0 : index
      %c0_173 = arith.constant 0 : index
      %280 = vector.load %arg14[%c0_172, %c0_173] : memref<8x32xf32, #tpu.memory_space<vmem>>, vector<8x32xf32>
      %c0_174 = arith.constant 0 : index
      %c0_175 = arith.constant 0 : index
      %281 = vector.load %arg5[%c0_174, %c0_175] : memref<16x32xf32, #tpu.memory_space<vmem>>, vector<1x32xf32>
      %c1_176 = arith.constant 1 : index
      %c0_177 = arith.constant 0 : index
      %282 = vector.load %arg5[%c1_176, %c0_177] : memref<16x32xf32, #tpu.memory_space<vmem>>, vector<1x32xf32>
      %cst_178 = arith.constant dense<0.000000e+00> : vector<8xf32>
      %283 = vector.multi_reduction <add>, %280, %cst_178 [1] : vector<8x32xf32> to vector<8xf32>
      %284 = vector.shape_cast %283 : vector<8xf32> to vector<8x1xf32>
      %cst_179 = arith.constant 3.200000e+01 : f32
      %285 = vector.broadcast %cst_179 : f32 to vector<8x1xf32>
      %286 = arith.divf %284, %285 : vector<8x1xf32>
      %287 = vector.broadcast %286 : vector<8x1xf32> to vector<8x32xf32>
      %288 = arith.subf %280, %287 : vector<8x32xf32>
      %289 = arith.mulf %288, %288 : vector<8x32xf32>
      %cst_180 = arith.constant dense<0.000000e+00> : vector<8xf32>
      %290 = vector.multi_reduction <add>, %289, %cst_180 [1] : vector<8x32xf32> to vector<8xf32>
      %291 = vector.shape_cast %290 : vector<8xf32> to vector<8x1xf32>
      %cst_181 = arith.constant 3.200000e+01 : f32
      %292 = vector.broadcast %cst_181 : f32 to vector<8x1xf32>
      %293 = arith.divf %291, %292 : vector<8x1xf32>
      %294 = vector.broadcast %286 : vector<8x1xf32> to vector<8x32xf32>
      %295 = arith.subf %280, %294 : vector<8x32xf32>
      %cst_182 = arith.constant 9.99999996E-13 : f32
      %296 = vector.broadcast %cst_182 : f32 to vector<8x1xf32>
      %297 = arith.addf %293, %296 : vector<8x1xf32>
      %298 = math.rsqrt %297 : vector<8x1xf32>
      %299 = vector.broadcast %298 : vector<8x1xf32> to vector<8x32xf32>
      %300 = arith.mulf %295, %299 : vector<8x32xf32>
      %301 = vector.broadcast %281 : vector<1x32xf32> to vector<8x32xf32>
      %302 = arith.mulf %300, %301 : vector<8x32xf32>
      %303 = vector.broadcast %282 : vector<1x32xf32> to vector<8x32xf32>
      %304 = arith.addf %302, %303 : vector<8x32xf32>
      %c0_183 = arith.constant 0 : index
      %c0_184 = arith.constant 0 : index
      %305 = vector.load %arg14[%c0_183, %c0_184] : memref<8x32xf32, #tpu.memory_space<vmem>>, vector<8x32xf32>
      tpu.vector_store %arg14[%c0_183, %c0_184], %304 {strides = array<i32>} : memref<8x32xf32, #tpu.memory_space<vmem>>, vector<8x32xf32>,
    } else {
    }
    %c0 = arith.constant 0 : index
    %c0_1 = arith.constant 0 : index
    %3 = vector.load %arg14[%c0, %c0_1] : memref<8x32xf32, #tpu.memory_space<vmem>>, vector<8x32xf32>
    %4 = arith.truncf %3 : vector<8x32xf32> to vector<8x32xbf16>
    %c0_2 = arith.constant 0 : index
    %c0_3 = arith.constant 0 : index
    %c0_4 = arith.constant 0 : index
    %5 = vector.load %arg3[%c0_2, %c0_3, %c0_4] : memref<1x1x8xi32, #tpu.memory_space<vmem>>, vector<1x1x8xi32>
    %6 = vector.shape_cast %5 : vector<1x1x8xi32> to vector<1x8xi32>
    %7 = arith.sitofp %6 : vector<1x8xi32> to vector<1x8xf32>
    %cst = arith.constant 1.000000e+00 : f32
    %8 = vector.broadcast %cst : f32 to vector<1x8xf32>
    %9 = arith.subf %8, %7 : vector<1x8xf32>
    %cst_5 = arith.constant -1.000000e+09 : f32
    %10 = vector.broadcast %cst_5 : f32 to vector<1x8xf32>
    %11 = arith.mulf %9, %10 : vector<1x8xf32>
    %cst_6 = arith.constant 0.000000e+00 : f32
    %12 = vector.broadcast %cst_6 : f32 to vector<8x32xf32>
    %c0_7 = arith.constant 0 : index
    %c0_8 = arith.constant 0 : index
    %c0_9 = arith.constant 0 : index
    %c0_10 = arith.constant 0 : index
    %13 = vector.load %arg6[%c0_7, %c0_8, %c0_9, %c0_10] : memref<1x6x32x16xbf16, #tpu.memory_space<vmem>>, vector<1x1x32x16xbf16>
    %14 = vector.shape_cast %13 : vector<1x1x32x16xbf16> to vector<32x16xbf16>
    %cst_11 = arith.constant dense<0.000000e+00> : vector<8x16xf32>
    %15 = tpu.matmul %4, %14, %cst_11 {dimension_numbers = #tpu.dot_dimension_numbers<[1], [0], [0], [1], [0, 0, 1, 1], [], []>} : vector<8x32xbf16>, vector<32x16xbf16>, vector<8x16xf32> -> vector<8x16xf32>
    %c0_12 = arith.constant 0 : index
    %c0_13 = arith.constant 0 : index
    %c0_14 = arith.constant 0 : index
    %c0_15 = arith.constant 0 : index
    %16 = vector.load %arg7[%c0_12, %c0_13, %c0_14, %c0_15] : memref<1x6x1x16xf32, #tpu.memory_space<vmem>>, vector<1x1x1x16xf32>
    %17 = vector.shape_cast %16 : vector<1x1x1x16xf32> to vector<1x16xf32>
    %18 = vector.broadcast %17 : vector<1x16xf32> to vector<8x16xf32>
    %19 = arith.addf %15, %18 : vector<8x16xf32>
    %c0_16 = arith.constant 0 : index
    %c2 = arith.constant 2 : index
    %c0_17 = arith.constant 0 : index
    %c0_18 = arith.constant 0 : index
    %20 = vector.load %arg6[%c0_16, %c2, %c0_17, %c0_18] : memref<1x6x32x16xbf16, #tpu.memory_space<vmem>>, vector<1x1x32x16xbf16>
    %21 = vector.shape_cast %20 : vector<1x1x32x16xbf16> to vector<32x16xbf16>
    %cst_19 = arith.constant dense<0.000000e+00> : vector<8x16xf32>
    %22 = tpu.matmul %4, %21, %cst_19 {dimension_numbers = #tpu.dot_dimension_numbers<[1], [0], [0], [1], [0, 0, 1, 1], [], []>} : vector<8x32xbf16>, vector<32x16xbf16>, vector<8x16xf32> -> vector<8x16xf32>
    %c0_20 = arith.constant 0 : index
    %c2_21 = arith.constant 2 : index
    %c0_22 = arith.constant 0 : index
    %c0_23 = arith.constant 0 : index
    %23 = vector.load %arg7[%c0_20, %c2_21, %c0_22, %c0_23] : memref<1x6x1x16xf32, #tpu.memory_space<vmem>>, vector<1x1x1x16xf32>
    %24 = vector.shape_cast %23 : vector<1x1x1x16xf32> to vector<1x16xf32>
    %25 = vector.broadcast %24 : vector<1x16xf32> to vector<8x16xf32>
    %26 = arith.addf %22, %25 : vector<8x16xf32>
    %c0_24 = arith.constant 0 : index
    %c4 = arith.constant 4 : index
    %c0_25 = arith.constant 0 : index
    %c0_26 = arith.constant 0 : index
    %27 = vector.load %arg6[%c0_24, %c4, %c0_25, %c0_26] : memref<1x6x32x16xbf16, #tpu.memory_space<vmem>>, vector<1x1x32x16xbf16>
    %28 = vector.shape_cast %27 : vector<1x1x32x16xbf16> to vector<32x16xbf16>
    %cst_27 = arith.constant dense<0.000000e+00> : vector<8x16xf32>
    %29 = tpu.matmul %4, %28, %cst_27 {dimension_numbers = #tpu.dot_dimension_numbers<[1], [0], [0], [1], [0, 0, 1, 1], [], []>} : vector<8x32xbf16>, vector<32x16xbf16>, vector<8x16xf32> -> vector<8x16xf32>
    %c0_28 = arith.constant 0 : index
    %c4_29 = arith.constant 4 : index
    %c0_30 = arith.constant 0 : index
    %c0_31 = arith.constant 0 : index
    %30 = vector.load %arg7[%c0_28, %c4_29, %c0_30, %c0_31] : memref<1x6x1x16xf32, #tpu.memory_space<vmem>>, vector<1x1x1x16xf32>
    %31 = vector.shape_cast %30 : vector<1x1x1x16xf32> to vector<1x16xf32>
    %32 = vector.broadcast %31 : vector<1x16xf32> to vector<8x16xf32>
    %33 = arith.addf %29, %32 : vector<8x16xf32>
    %34 = arith.truncf %19 : vector<8x16xf32> to vector<8x16xbf16>
    %35 = arith.truncf %26 : vector<8x16xf32> to vector<8x16xbf16>
    %cst_32 = arith.constant dense<0.000000e+00> : vector<8x8xf32>
    %36 = tpu.matmul %34, %35, %cst_32 {dimension_numbers = #tpu.dot_dimension_numbers<[1], [1], [0], [0], [0, 0, 1, 0], [], []>} : vector<8x16xbf16>, vector<8x16xbf16>, vector<8x8xf32> -> vector<8x8xf32>
    %cst_33 = arith.constant 2.500000e-01 : f32
    %37 = vector.broadcast %cst_33 : f32 to vector<8x8xf32>
    %38 = arith.mulf %36, %37 : vector<8x8xf32>
    %39 = vector.broadcast %11 : vector<1x8xf32> to vector<8x8xf32>
    %40 = arith.addf %38, %39 : vector<8x8xf32>
    %cst_34 = arith.constant dense<0xFF800000> : vector<8xf32>
    %41 = vector.multi_reduction <maximumf>, %40, %cst_34 [1] : vector<8x8xf32> to vector<8xf32>
    %42 = vector.shape_cast %41 : vector<8xf32> to vector<8x1xf32>
    %43 = vector.broadcast %42 : vector<8x1xf32> to vector<8x8xf32>
    %44 = arith.subf %40, %43 : vector<8x8xf32>
    %45 = math.exp %44 : vector<8x8xf32>
    %cst_35 = arith.constant dense<0.000000e+00> : vector<8xf32>
    %46 = vector.multi_reduction <add>, %45, %cst_35 [1] : vector<8x8xf32> to vector<8xf32>
    %47 = vector.shape_cast %46 : vector<8xf32> to vector<8x1xf32>
    %48 = tpu.reciprocal %47 {approx = true} : vector<8x1xf32> -> vector<8x1xf32>
    %49 = vector.broadcast %48 : vector<8x1xf32> to vector<8x8xf32>
    %50 = arith.mulf %45, %49 : vector<8x8xf32>
    %51 = arith.truncf %50 : vector<8x8xf32> to vector<8x8xbf16>
    %52 = arith.truncf %33 : vector<8x16xf32> to vector<8x16xbf16>
    %cst_36 = arith.constant dense<0.000000e+00> : vector<8x16xf32>
    %53 = tpu.matmul %51, %52, %cst_36 {dimension_numbers = #tpu.dot_dimension_numbers<[1], [0], [0], [1], [0, 0, 1, 1], [], []>} : vector<8x8xbf16>, vector<8x16xbf16>, vector<8x16xf32> -> vector<8x16xf32>
    %54 = arith.truncf %53 : vector<8x16xf32> to vector<8x16xbf16>
    %c0_37 = arith.constant 0 : index
    %c0_38 = arith.constant 0 : index
    %c0_39 = arith.constant 0 : index
    %c0_40 = arith.constant 0 : index
    %55 = vector.load %arg8[%c0_37, %c0_38, %c0_39, %c0_40] : memref<1x2x16x32xbf16, #tpu.memory_space<vmem>>, vector<1x1x16x32xbf16>
    %56 = vector.shape_cast %55 : vector<1x1x16x32xbf16> to vector<16x32xbf16>
    %cst_41 = arith.constant dense<0.000000e+00> : vector<8x32xf32>
    %57 = tpu.matmul %54, %56, %cst_41 {dimension_numbers = #tpu.dot_dimension_numbers<[1], [0], [0], [1], [0, 0, 1, 1], [], []>} : vector<8x16xbf16>, vector<16x32xbf16>, vector<8x32xf32> -> vector<8x32xf32>
    %58 = arith.addf %12, %57 : vector<8x32xf32>
    %c0_42 = arith.constant 0 : index
    %c1 = arith.constant 1 : index
    %c0_43 = arith.constant 0 : index
    %c0_44 = arith.constant 0 : index
    %59 = vector.load %arg6[%c0_42, %c1, %c0_43, %c0_44] : memref<1x6x32x16xbf16, #tpu.memory_space<vmem>>, vector<1x1x32x16xbf16>
    %60 = vector.shape_cast %59 : vector<1x1x32x16xbf16> to vector<32x16xbf16>
    %cst_45 = arith.constant dense<0.000000e+00> : vector<8x16xf32>
    %61 = tpu.matmul %4, %60, %cst_45 {dimension_numbers = #tpu.dot_dimension_numbers<[1], [0], [0], [1], [0, 0, 1, 1], [], []>} : vector<8x32xbf16>, vector<32x16xbf16>, vector<8x16xf32> -> vector<8x16xf32>
    %c0_46 = arith.constant 0 : index
    %c1_47 = arith.constant 1 : index
    %c0_48 = arith.constant 0 : index
    %c0_49 = arith.constant 0 : index
    %62 = vector.load %arg7[%c0_46, %c1_47, %c0_48, %c0_49] : memref<1x6x1x16xf32, #tpu.memory_space<vmem>>, vector<1x1x1x16xf32>
    %63 = vector.shape_cast %62 : vector<1x1x1x16xf32> to vector<1x16xf32>
    %64 = vector.broadcast %63 : vector<1x16xf32> to vector<8x16xf32>
    %65 = arith.addf %61, %64 : vector<8x16xf32>
    %c0_50 = arith.constant 0 : index
    %c3 = arith.constant 3 : index
    %c0_51 = arith.constant 0 : index
    %c0_52 = arith.constant 0 : index
    %66 = vector.load %arg6[%c0_50, %c3, %c0_51, %c0_52] : memref<1x6x32x16xbf16, #tpu.memory_space<vmem>>, vector<1x1x32x16xbf16>
    %67 = vector.shape_cast %66 : vector<1x1x32x16xbf16> to vector<32x16xbf16>
    %cst_53 = arith.constant dense<0.000000e+00> : vector<8x16xf32>
    %68 = tpu.matmul %4, %67, %cst_53 {dimension_numbers = #tpu.dot_dimension_numbers<[1], [0], [0], [1], [0, 0, 1, 1], [], []>} : vector<8x32xbf16>, vector<32x16xbf16>, vector<8x16xf32> -> vector<8x16xf32>
    %c0_54 = arith.constant 0 : index
    %c3_55 = arith.constant 3 : index
    %c0_56 = arith.constant 0 : index
    %c0_57 = arith.constant 0 : index
    %69 = vector.load %arg7[%c0_54, %c3_55, %c0_56, %c0_57] : memref<1x6x1x16xf32, #tpu.memory_space<vmem>>, vector<1x1x1x16xf32>
    %70 = vector.shape_cast %69 : vector<1x1x1x16xf32> to vector<1x16xf32>
    %71 = vector.broadcast %70 : vector<1x16xf32> to vector<8x16xf32>
    %72 = arith.addf %68, %71 : vector<8x16xf32>
    %c0_58 = arith.constant 0 : index
    %c5 = arith.constant 5 : index
    %c0_59 = arith.constant 0 : index
    %c0_60 = arith.constant 0 : index
    %73 = vector.load %arg6[%c0_58, %c5, %c0_59, %c0_60] : memref<1x6x32x16xbf16, #tpu.memory_space<vmem>>, vector<1x1x32x16xbf16>
    %74 = vector.shape_cast %73 : vector<1x1x32x16xbf16> to vector<32x16xbf16>
    %cst_61 = arith.constant dense<0.000000e+00> : vector<8x16xf32>
    %75 = tpu.matmul %4, %74, %cst_61 {dimension_numbers = #tpu.dot_dimension_numbers<[1], [0], [0], [1], [0, 0, 1, 1], [], []>} : vector<8x32xbf16>, vector<32x16xbf16>, vector<8x16xf32> -> vector<8x16xf32>
    %c0_62 = arith.constant 0 : index
    %c5_63 = arith.constant 5 : index
    %c0_64 = arith.constant 0 : index
    %c0_65 = arith.constant 0 : index
    %76 = vector.load %arg7[%c0_62, %c5_63, %c0_64, %c0_65] : memref<1x6x1x16xf32, #tpu.memory_space<vmem>>, vector<1x1x1x16xf32>
    %77 = vector.shape_cast %76 : vector<1x1x1x16xf32> to vector<1x16xf32>
    %78 = vector.broadcast %77 : vector<1x16xf32> to vector<8x16xf32>
    %79 = arith.addf %75, %78 : vector<8x16xf32>
    %80 = arith.truncf %65 : vector<8x16xf32> to vector<8x16xbf16>
    %81 = arith.truncf %72 : vector<8x16xf32> to vector<8x16xbf16>
    %cst_66 = arith.constant dense<0.000000e+00> : vector<8x8xf32>
    %82 = tpu.matmul %80, %81, %cst_66 {dimension_numbers = #tpu.dot_dimension_numbers<[1], [1], [0], [0], [0, 0, 1, 0], [], []>} : vector<8x16xbf16>, vector<8x16xbf16>, vector<8x8xf32> -> vector<8x8xf32>
    %cst_67 = arith.constant 2.500000e-01 : f32
    %83 = vector.broadcast %cst_67 : f32 to vector<8x8xf32>
    %84 = arith.mulf %82, %83 : vector<8x8xf32>
    %85 = vector.broadcast %11 : vector<1x8xf32> to vector<8x8xf32>
    %86 = arith.addf %84, %85 : vector<8x8xf32>
    %cst_68 = arith.constant dense<0xFF800000> : vector<8xf32>
    %87 = vector.multi_reduction <maximumf>, %86, %cst_68 [1] : vector<8x8xf32> to vector<8xf32>
    %88 = vector.shape_cast %87 : vector<8xf32> to vector<8x1xf32>
    %89 = vector.broadcast %88 : vector<8x1xf32> to vector<8x8xf32>
    %90 = arith.subf %86, %89 : vector<8x8xf32>
    %91 = math.exp %90 : vector<8x8xf32>
    %cst_69 = arith.constant dense<0.000000e+00> : vector<8xf32>
    %92 = vector.multi_reduction <add>, %91, %cst_69 [1] : vector<8x8xf32> to vector<8xf32>
    %93 = vector.shape_cast %92 : vector<8xf32> to vector<8x1xf32>
    %94 = tpu.reciprocal %93 {approx = true} : vector<8x1xf32> -> vector<8x1xf32>
    %95 = vector.broadcast %94 : vector<8x1xf32> to vector<8x8xf32>
    %96 = arith.mulf %91, %95 : vector<8x8xf32>
    %97 = arith.truncf %96 : vector<8x8xf32> to vector<8x8xbf16>
    %98 = arith.truncf %79 : vector<8x16xf32> to vector<8x16xbf16>
    %cst_70 = arith.constant dense<0.000000e+00> : vector<8x16xf32>
    %99 = tpu.matmul %97, %98, %cst_70 {dimension_numbers = #tpu.dot_dimension_numbers<[1], [0], [0], [1], [0, 0, 1, 1], [], []>} : vector<8x8xbf16>, vector<8x16xbf16>, vector<8x16xf32> -> vector<8x16xf32>
    %100 = arith.truncf %99 : vector<8x16xf32> to vector<8x16xbf16>
    %c0_71 = arith.constant 0 : index
    %c1_72 = arith.constant 1 : index
    %c0_73 = arith.constant 0 : index
    %c0_74 = arith.constant 0 : index
    %101 = vector.load %arg8[%c0_71, %c1_72, %c0_73, %c0_74] : memref<1x2x16x32xbf16, #tpu.memory_space<vmem>>, vector<1x1x16x32xbf16>
    %102 = vector.shape_cast %101 : vector<1x1x16x32xbf16> to vector<16x32xbf16>
    %cst_75 = arith.constant dense<0.000000e+00> : vector<8x32xf32>
    %103 = tpu.matmul %100, %102, %cst_75 {dimension_numbers = #tpu.dot_dimension_numbers<[1], [0], [0], [1], [0, 0, 1, 1], [], []>} : vector<8x16xbf16>, vector<16x32xbf16>, vector<8x32xf32> -> vector<8x32xf32>
    %104 = arith.addf %58, %103 : vector<8x32xf32>
    %c0_76 = arith.constant 0 : index
    %c0_77 = arith.constant 0 : index
    %c0_78 = arith.constant 0 : index
    %105 = vector.load %arg12[%c0_76, %c0_77, %c0_78] : memref<1x6x32xf32, #tpu.memory_space<vmem>>, vector<1x1x32xf32>
    %106 = vector.shape_cast %105 : vector<1x1x32xf32> to vector<1x32xf32>
    %107 = vector.broadcast %106 : vector<1x32xf32> to vector<8x32xf32>
    %108 = arith.addf %104, %107 : vector<8x32xf32>
    %109 = arith.addf %3, %108 : vector<8x32xf32>
    %c0_79 = arith.constant 0 : index
    %c2_80 = arith.constant 2 : index
    %c0_81 = arith.constant 0 : index
    %110 = vector.load %arg12[%c0_79, %c2_80, %c0_81] : memref<1x6x32xf32, #tpu.memory_space<vmem>>, vector<1x1x32xf32>
    %111 = vector.shape_cast %110 : vector<1x1x32xf32> to vector<1x32xf32>
    %c0_82 = arith.constant 0 : index
    %c3_83 = arith.constant 3 : index
    %c0_84 = arith.constant 0 : index
    %112 = vector.load %arg12[%c0_82, %c3_83, %c0_84] : memref<1x6x32xf32, #tpu.memory_space<vmem>>, vector<1x1x32xf32>
    %113 = vector.shape_cast %112 : vector<1x1x32xf32> to vector<1x32xf32>
    %cst_85 = arith.constant dense<0.000000e+00> : vector<8xf32>
    %114 = vector.multi_reduction <add>, %109, %cst_85 [1] : vector<8x32xf32> to vector<8xf32>
    %115 = vector.shape_cast %114 : vector<8xf32> to vector<8x1xf32>
    %cst_86 = arith.constant 3.200000e+01 : f32
    %116 = vector.broadcast %cst_86 : f32 to vector<8x1xf32>
    %117 = arith.divf %115, %116 : vector<8x1xf32>
    %118 = vector.broadcast %117 : vector<8x1xf32> to vector<8x32xf32>
    %119 = arith.subf %109, %118 : vector<8x32xf32>
    %120 = arith.mulf %119, %119 : vector<8x32xf32>
    %cst_87 = arith.constant dense<0.000000e+00> : vector<8xf32>
    %121 = vector.multi_reduction <add>, %120, %cst_87 [1] : vector<8x32xf32> to vector<8xf32>
    %122 = vector.shape_cast %121 : vector<8xf32> to vector<8x1xf32>
    %cst_88 = arith.constant 3.200000e+01 : f32
    %123 = vector.broadcast %cst_88 : f32 to vector<8x1xf32>
    %124 = arith.divf %122, %123 : vector<8x1xf32>
    %125 = vector.broadcast %117 : vector<8x1xf32> to vector<8x32xf32>
    %126 = arith.subf %109, %125 : vector<8x32xf32>
    %cst_89 = arith.constant 9.99999996E-13 : f32
    %127 = vector.broadcast %cst_89 : f32 to vector<8x1xf32>
    %128 = arith.addf %124, %127 : vector<8x1xf32>
    %129 = math.rsqrt %128 : vector<8x1xf32>
    %130 = vector.broadcast %129 : vector<8x1xf32> to vector<8x32xf32>
    %131 = arith.mulf %126, %130 : vector<8x32xf32>
    %132 = vector.broadcast %111 : vector<1x32xf32> to vector<8x32xf32>
    %133 = arith.mulf %131, %132 : vector<8x32xf32>
    %134 = vector.broadcast %113 : vector<1x32xf32> to vector<8x32xf32>
    %135 = arith.addf %133, %134 : vector<8x32xf32>
    %136 = arith.truncf %135 : vector<8x32xf32> to vector<8x32xbf16>
    %c0_90 = arith.constant 0 : index
    %c0_91 = arith.constant 0 : index
    %c0_92 = arith.constant 0 : index
    %137 = vector.load %arg9[%c0_90, %c0_91, %c0_92] : memref<1x32x64xbf16, #tpu.memory_space<vmem>>, vector<1x32x64xbf16>
    %138 = vector.shape_cast %137 : vector<1x32x64xbf16> to vector<32x64xbf16>
    %cst_93 = arith.constant dense<0.000000e+00> : vector<8x64xf32>
    %139 = tpu.matmul %136, %138, %cst_93 {dimension_numbers = #tpu.dot_dimension_numbers<[1], [0], [0], [1], [0, 0, 1, 1], [], []>} : vector<8x32xbf16>, vector<32x64xbf16>, vector<8x64xf32> -> vector<8x64xf32>
    %c0_94 = arith.constant 0 : index
    %c0_95 = arith.constant 0 : index
    %c0_96 = arith.constant 0 : index
    %140 = vector.load %arg11[%c0_94, %c0_95, %c0_96] : memref<1x1x64xf32, #tpu.memory_space<vmem>>, vector<1x1x64xf32>
    %141 = vector.shape_cast %140 : vector<1x1x64xf32> to vector<1x64xf32>
    %142 = vector.broadcast %141 : vector<1x64xf32> to vector<8x64xf32>
    %143 = arith.addf %139, %142 : vector<8x64xf32>
    %cst_97 = arith.constant 5.000000e-01 : f32
    %144 = vector.broadcast %cst_97 : f32 to vector<8x64xf32>
    %145 = arith.mulf %143, %144 : vector<8x64xf32>
    %cst_98 = arith.constant 0.707106769 : f32
    %146 = vector.broadcast %cst_98 : f32 to vector<8x64xf32>
    %147 = arith.mulf %143, %146 : vector<8x64xf32>
    %cst_99 = arith.constant 0.000000e+00 : f32
    %148 = vector.broadcast %cst_99 : f32 to vector<8x64xf32>
    %149 = arith.cmpf oge, %147, %148 : vector<8x64xf32>
    %cst_100 = arith.constant 1.000000e+00 : f32
    %cst_101 = arith.constant -1.000000e+00 : f32
    %150 = vector.broadcast %cst_100 : f32 to vector<8x64xf32>
    %151 = vector.broadcast %cst_101 : f32 to vector<8x64xf32>
    %152 = arith.select %149, %150, %151 : vector<8x64xi1>, vector<8x64xf32>
    %153 = math.absf %147 : vector<8x64xf32>
    %cst_102 = arith.constant 0.327591091 : f32
    %154 = vector.broadcast %cst_102 : f32 to vector<8x64xf32>
    %155 = arith.mulf %154, %153 : vector<8x64xf32>
    %cst_103 = arith.constant 1.000000e+00 : f32
    %156 = vector.broadcast %cst_103 : f32 to vector<8x64xf32>
    %157 = arith.addf %156, %155 : vector<8x64xf32>
    %cst_104 = arith.constant 1.000000e+00 : f32
    %158 = vector.broadcast %cst_104 : f32 to vector<8x64xf32>
    %159 = arith.divf %158, %157 : vector<8x64xf32>
    %cst_105 = arith.constant 1.06140542 : f32
    %160 = vector.broadcast %cst_105 : f32 to vector<8x64xf32>
    %161 = arith.mulf %160, %159 : vector<8x64xf32>
    %cst_106 = arith.constant -1.45315206 : f32
    %162 = vector.broadcast %cst_106 : f32 to vector<8x64xf32>
    %163 = arith.addf %161, %162 : vector<8x64xf32>
    %164 = arith.mulf %163, %159 : vector<8x64xf32>
    %cst_107 = arith.constant 1.42141378 : f32
    %165 = vector.broadcast %cst_107 : f32 to vector<8x64xf32>
    %166 = arith.addf %164, %165 : vector<8x64xf32>
    %167 = arith.mulf %166, %159 : vector<8x64xf32>
    %cst_108 = arith.constant -0.284496725 : f32
    %168 = vector.broadcast %cst_108 : f32 to vector<8x64xf32>
    %169 = arith.addf %167, %168 : vector<8x64xf32>
    %170 = arith.mulf %169, %159 : vector<8x64xf32>
    %cst_109 = arith.constant 0.254829586 : f32
    %171 = vector.broadcast %cst_109 : f32 to vector<8x64xf32>
    %172 = arith.addf %170, %171 : vector<8x64xf32>
    %173 = arith.mulf %172, %159 : vector<8x64xf32>
    %cst_110 = arith.constant 0.000000e+00 : f32
    %174 = vector.broadcast %cst_110 : f32 to vector<8x64xf32>
    %175 = arith.subf %174, %153 : vector<8x64xf32>
    %176 = arith.mulf %175, %153 : vector<8x64xf32>
    %177 = math.exp %176 : vector<8x64xf32>
    %178 = arith.mulf %173, %177 : vector<8x64xf32>
    %cst_111 = arith.constant 1.000000e+00 : f32
    %179 = vector.broadcast %cst_111 : f32 to vector<8x64xf32>
    %180 = arith.subf %179, %178 : vector<8x64xf32>
    %181 = arith.mulf %152, %180 : vector<8x64xf32>
    %cst_112 = arith.constant 1.000000e+00 : f32
    %182 = vector.broadcast %cst_112 : f32 to vector<8x64xf32>
    %183 = arith.addf %182, %181 : vector<8x64xf32>
    %184 = arith.mulf %145, %183 : vector<8x64xf32>
    %185 = arith.truncf %184 : vector<8x64xf32> to vector<8x64xbf16>
    %c0_113 = arith.constant 0 : index
    %c0_114 = arith.constant 0 : index
    %c0_115 = arith.constant 0 : index
    %186 = vector.load %arg10[%c0_113, %c0_114, %c0_115] : memref<1x64x32xbf16, #tpu.memory_space<vmem>>, vector<1x64x32xbf16>
    %187 = vector.shape_cast %186 : vector<1x64x32xbf16> to vector<64x32xbf16>
    %cst_116 = arith.constant dense<0.000000e+00> : vector<8x32xf32>
    %188 = tpu.matmul %185, %187, %cst_116 {dimension_numbers = #tpu.dot_dimension_numbers<[1], [0], [0], [1], [0, 0, 1, 1], [], []>} : vector<8x64xbf16>, vector<64x32xbf16>, vector<8x32xf32> -> vector<8x32xf32>
    %c0_117 = arith.constant 0 : index
    %c1_118 = arith.constant 1 : index
    %c0_119 = arith.constant 0 : index
    %189 = vector.load %arg12[%c0_117, %c1_118, %c0_119] : memref<1x6x32xf32, #tpu.memory_space<vmem>>, vector<1x1x32xf32>
    %190 = vector.shape_cast %189 : vector<1x1x32xf32> to vector<1x32xf32>
    %191 = vector.broadcast %190 : vector<1x32xf32> to vector<8x32xf32>
    %192 = arith.addf %188, %191 : vector<8x32xf32>
    %193 = arith.addf %135, %192 : vector<8x32xf32>
    %c0_120 = arith.constant 0 : index
    %c4_121 = arith.constant 4 : index
    %c0_122 = arith.constant 0 : index
    %194 = vector.load %arg12[%c0_120, %c4_121, %c0_122] : memref<1x6x32xf32, #tpu.memory_space<vmem>>, vector<1x1x32xf32>
    %195 = vector.shape_cast %194 : vector<1x1x32xf32> to vector<1x32xf32>
    %c0_123 = arith.constant 0 : index
    %c5_124 = arith.constant 5 : index
    %c0_125 = arith.constant 0 : index
    %196 = vector.load %arg12[%c0_123, %c5_124, %c0_125] : memref<1x6x32xf32, #tpu.memory_space<vmem>>, vector<1x1x32xf32>
    %197 = vector.shape_cast %196 : vector<1x1x32xf32> to vector<1x32xf32>
    %cst_126 = arith.constant dense<0.000000e+00> : vector<8xf32>
    %198 = vector.multi_reduction <add>, %193, %cst_126 [1] : vector<8x32xf32> to vector<8xf32>
    %199 = vector.shape_cast %198 : vector<8xf32> to vector<8x1xf32>
    %cst_127 = arith.constant 3.200000e+01 : f32
    %200 = vector.broadcast %cst_127 : f32 to vector<8x1xf32>
    %201 = arith.divf %199, %200 : vector<8x1xf32>
    %202 = vector.broadcast %201 : vector<8x1xf32> to vector<8x32xf32>
    %203 = arith.subf %193, %202 : vector<8x32xf32>
    %204 = arith.mulf %203, %203 : vector<8x32xf32>
    %cst_128 = arith.constant dense<0.000000e+00> : vector<8xf32>
    %205 = vector.multi_reduction <add>, %204, %cst_128 [1] : vector<8x32xf32> to vector<8xf32>
    %206 = vector.shape_cast %205 : vector<8xf32> to vector<8x1xf32>
    %cst_129 = arith.constant 3.200000e+01 : f32
    %207 = vector.broadcast %cst_129 : f32 to vector<8x1xf32>
    %208 = arith.divf %206, %207 : vector<8x1xf32>
    %209 = vector.broadcast %201 : vector<8x1xf32> to vector<8x32xf32>
    %210 = arith.subf %193, %209 : vector<8x32xf32>
    %cst_130 = arith.constant 9.99999996E-13 : f32
    %211 = vector.broadcast %cst_130 : f32 to vector<8x1xf32>
    %212 = arith.addf %208, %211 : vector<8x1xf32>
    %213 = math.rsqrt %212 : vector<8x1xf32>
    %214 = vector.broadcast %213 : vector<8x1xf32> to vector<8x32xf32>
    %215 = arith.mulf %210, %214 : vector<8x32xf32>
    %216 = vector.broadcast %195 : vector<1x32xf32> to vector<8x32xf32>
    %217 = arith.mulf %215, %216 : vector<8x32xf32>
    %218 = vector.broadcast %197 : vector<1x32xf32> to vector<8x32xf32>
    %219 = arith.addf %217, %218 : vector<8x32xf32>
    %c0_131 = arith.constant 0 : index
    %c0_132 = arith.constant 0 : index
    %220 = vector.load %arg14[%c0_131, %c0_132] : memref<8x32xf32, #tpu.memory_space<vmem>>, vector<8x32xf32>
    tpu.vector_store %arg14[%c0_131, %c0_132], %219 {strides = array<i32>} : memref<8x32xf32, #tpu.memory_space<vmem>>, vector<8x32xf32>,
    %c1_i32 = arith.constant 1 : i32
    %221 = arith.cmpi eq, %arg1, %c1_i32 : i32
    %222 = arith.extui %221 : i1 to i32
    %c0_i32_133 = arith.constant 0 : i32
    %223 = arith.cmpi ne, %222, %c0_i32_133 : i32
    scf.if %223 {
      %224 = vector.extract_strided_slice %219 {offsets = [0, 0], sizes = [1, 32], strides = [1, 1]} : vector<8x32xf32> to vector<1x32xf32>
      %c0_134 = arith.constant 0 : index
      %c0_135 = arith.constant 0 : index
      %c0_136 = arith.constant 0 : index
      %225 = vector.load %arg13[%c0_134, %c0_135, %c0_136] : memref<1x1x32xf32, #tpu.memory_space<vmem>>, vector<1x1x32xf32>
      %226 = vector.shape_cast %225 : vector<1x1x32xf32> to vector<1x32xf32>
      %227 = vector.shape_cast %224 : vector<1x32xf32> to vector<1x1x32xf32>
      tpu.vector_store %arg13[%c0_134, %c0_135, %c0_136], %227 {strides = array<i32>} : memref<1x1x32xf32, #tpu.memory_space<vmem>>, vector<1x1x32xf32>,
    } else {
    }
    return
  }
  func.func @transform_0(%arg0: i32, %arg1: i32, %arg2: memref<2x8xi32, #tpu.memory_space<smem>>) -> (i32, i32, i32) {
    %c0_i32 = arith.constant 0 : i32
    %c0_i32_0 = arith.constant 0 : i32
    %c0_i32_1 = arith.constant 0 : i32
    return %arg0, %c0_i32, %c0_i32_0 : i32, i32, i32
  }
  func.func @transform_1(%arg0: i32, %arg1: i32, %arg2: memref<2x8xi32, #tpu.memory_space<smem>>) -> (i32, i32) {
    %c0_i32 = arith.constant 0 : i32
    %c0_i32_0 = arith.constant 0 : i32
    %c0_i32_1 = arith.constant 0 : i32
    return %c0_i32, %c0_i32_0 : i32, i32
  }
  func.func @transform_2(%arg0: i32, %arg1: i32, %arg2: memref<2x8xi32, #tpu.memory_space<smem>>) -> (i32, i32) {
    %c0_i32 = arith.constant 0 : i32
    %c0_i32_0 = arith.constant 0 : i32
    %c0_i32_1 = arith.constant 0 : i32
    return %c0_i32, %c0_i32_0 : i32, i32
  }
  func.func @transform_3(%arg0: i32, %arg1: i32, %arg2: memref<2x8xi32, #tpu.memory_space<smem>>) -> (i32, i32, i32, i32) {
    %c0_i32 = arith.constant 0 : i32
    %c0_i32_0 = arith.constant 0 : i32
    %c0_i32_1 = arith.constant 0 : i32
    %c0_i32_2 = arith.constant 0 : i32
    return %arg1, %c0_i32, %c0_i32_0, %c0_i32_1 : i32, i32, i32, i32
  }
  func.func @transform_4(%arg0: i32, %arg1: i32, %arg2: memref<2x8xi32, #tpu.memory_space<smem>>) -> (i32, i32, i32, i32) {
    %c0_i32 = arith.constant 0 : i32
    %c0_i32_0 = arith.constant 0 : i32
    %c0_i32_1 = arith.constant 0 : i32
    %c0_i32_2 = arith.constant 0 : i32
    return %arg1, %c0_i32, %c0_i32_0, %c0_i32_1 : i32, i32, i32, i32
  }
  func.func @transform_5(%arg0: i32, %arg1: i32, %arg2: memref<2x8xi32, #tpu.memory_space<smem>>) -> (i32, i32, i32, i32) {
    %c0_i32 = arith.constant 0 : i32
    %c0_i32_0 = arith.constant 0 : i32
    %c0_i32_1 = arith.constant 0 : i32
    %c0_i32_2 = arith.constant 0 : i32
    return %arg1, %c0_i32, %c0_i32_0, %c0_i32_1 : i32, i32, i32, i32
  }
  func.func @transform_6(%arg0: i32, %arg1: i32, %arg2: memref<2x8xi32, #tpu.memory_space<smem>>) -> (i32, i32, i32) {
    %c0_i32 = arith.constant 0 : i32
    %c0_i32_0 = arith.constant 0 : i32
    %c0_i32_1 = arith.constant 0 : i32
    return %arg1, %c0_i32, %c0_i32_0 : i32, i32, i32
  }
  func.func @transform_7(%arg0: i32, %arg1: i32, %arg2: memref<2x8xi32, #tpu.memory_space<smem>>) -> (i32, i32, i32) {
    %c0_i32 = arith.constant 0 : i32
    %c0_i32_0 = arith.constant 0 : i32
    %c0_i32_1 = arith.constant 0 : i32
    return %arg1, %c0_i32, %c0_i32_0 : i32, i32, i32
  }
  func.func @transform_8(%arg0: i32, %arg1: i32, %arg2: memref<2x8xi32, #tpu.memory_space<smem>>) -> (i32, i32, i32) {
    %c0_i32 = arith.constant 0 : i32
    %c0_i32_0 = arith.constant 0 : i32
    %c0_i32_1 = arith.constant 0 : i32
    return %arg1, %c0_i32, %c0_i32_0 : i32, i32, i32
  }
  func.func @transform_9(%arg0: i32, %arg1: i32, %arg2: memref<2x8xi32, #tpu.memory_space<smem>>) -> (i32, i32, i32) {
    %c0_i32 = arith.constant 0 : i32
    %c0_i32_0 = arith.constant 0 : i32
    %c0_i32_1 = arith.constant 0 : i32
    return %arg1, %c0_i32, %c0_i32_0 : i32, i32, i32
  }
  func.func @transform_10(%arg0: i32, %arg1: i32, %arg2: memref<2x8xi32, #tpu.memory_space<smem>>) -> (i32, i32, i32) {
    %c0_i32 = arith.constant 0 : i32
    %c0_i32_0 = arith.constant 0 : i32
    %c0_i32_1 = arith.constant 0 : i32
    return %arg0, %c0_i32, %c0_i32_0 : i32, i32, i32
  }
}

</mosaic_0001>

<bundles_post_ra>
// kernel: text_encoder_forward.1
= control target key start
LH: loop header
LB: loop body
LE: loop exit
PB: predicated region body
PF: predicated region fallthrough
CT: control target
= control target key end

     0   :  { %s1740_s20 = smov [#allocation4]   ;;  %s2154_s0 = inlined_call_operand.vmem [shape: s32[2,8], index: 0, kind: input, shape index: {}]   ;;  %s2155_s1 = inlined_call_operand.vmem [shape: s32[2,1,8], index: 1, kind: input, shape index: {}]   ;;  %s2156_s2 = inlined_call_operand.vmem [shape: f32[100,32], index: 2, kind: input, shape index: {}]   ;;  %s2157_s3 = inlined_call_operand.vmem [shape: f32[72,32], index: 3, kind: input, shape index: {}]   ;;  %s2158_s4 = inlined_call_operand.vmem [shape: bf16[2,6,32,16], index: 4, kind: input, shape index: {}]   ;;  %s2159_s5 = inlined_call_operand.vmem [shape: f32[2,6,1,16], index: 5, kind: input, shape index: {}]   ;;  %s2160_s6 = inlined_call_operand.vmem [shape: bf16[2,2,16,32], index: 6, kind: input, shape index: {}]   ;;  %s2161_s7 = inlined_call_operand.vmem [shape: bf16[2,32,64], index: 7, kind: input, shape index: {}]   ;;  %s2162_s8 = inlined_call_operand.vmem [shape: bf16[2,64,32], index: 8, kind: input, shape index: {}]   ;;  %s2163_s9 = inlined_call_operand.vmem [shape: f32[2,1,64], index: 9, kind: input, shape index: {}]   ;;  %s2164_s10 = inlined_call_operand.vmem [shape: f32[2,6,32], index: 10, kind: input, shape index: {}]   ;;  %s2165_s11 = inlined_call_operand.hbm [shape: f32[2,1,32], index: 11, kind: output, shape index: {}]  }
   0x1   :  { %2180 = sst [smem:[#allocation23_spill]] %s2155_s1  ;;  %s17_s19 = sshll.u32 %s2154_s0, 4  ;;  %s18_s19 = int_to_ptr.vmem [resolvable:$true] %s17_s19 }
   0x2   :  { %2181 = sst [smem:[#allocation24_spill]] %s2158_s4 }
   0x3   :  { %2182 = sst [smem:[#allocation25_spill]] %s2159_s5 }
   0x4   :  { %2183 = sst [smem:[#allocation26_spill]] %s2160_s6 }
   0x5   :  { %2184 = sst [smem:[#allocation27_spill]] %s2161_s7 }
   0x6   :  { %2185 = sst [smem:[#allocation28_spill]] %s2162_s8 }
   0x7   :  { %2186 = sst [smem:[#allocation29_spill]] %s2164_s10 }
   0x8   :  { %2187 = sst [smem:[#allocation30_spill]] %s2165_s11 }
   0x9   :  { %20 = dma.vmem_to_smem %s18_s19, 32, %s1740_s20, [#allocation3] }
   0xa   :  { %1702 = dma.done.wait [#allocation3], 32 }
   0xb   :  { %1703 = vsyncadd [#allocation3], 4294967264 }
   0xc   :  { %23 = sfence }
   0xd   :  { %24 = vsyncpa [#allocation6], 0 }
   0xe   :  { %26 = vsyncpa [#allocation6 + $0x1], 0  ;;  %s1807_s21 = smov 0   ;;  %s1809_s22 = smov 0  }
   0xf   :  { %s1811_s23 = smov 0   ;;  %s1813_s24 = smov 0  }
  0x10   :  { %s1815_s25 = smov 0   ;;  %s1817_s26 = smov 0  }
  0x11   :  { %s1819_s0 = smov 0   ;;  %s1821_s27 = smov 0  }
  0x12 LB: > { %2188 = sst [smem:[#allocation9_spill]] %s1710_s21  ;;  %s1354_s28 = sadd.s32 4294967295, %s1738_s27   ;;  %s1738_s27 = sphi %s1821_s27, %s32_s27   ;;  %s1734_s0 = sphi %s1819_s0, %s2233_s0   ;;  %s1730_s26 = sphi %s1817_s26, %s2232_s26   ;;  %s1726_s25 = sphi %s1815_s25, %s2231_s25   ;;  %s1722_s24 = sphi %s1813_s24, %s2230_s24   ;;  %s1718_s23 = sphi %s1811_s23, %s2229_s23   ;;  %s1714_s22 = sphi %s1809_s22, %s2228_s22   ;;  %s1710_s21 = sphi %s1807_s21, %s2227_s21  }
  0x13   : > { %2189 = sst [smem:[#allocation10_spill]] %s1714_s22  ;;  %s1355_s29 = sadd.s32 4294967294, %s1738_s27  }
  0x14   : > { %2190 = sst [smem:[#allocation11_spill]] %s1718_s23  ;;  %s41_s30 = sadd.s32 1, %s1730_s26 }
  0x15   : > { %2191 = sst [smem:[#allocation12_spill]] %s1722_s24  ;;  %p42_p0 = scmp.ge.s32.totalorder %s41_s30, 2 }
  0x16   : > { %2192 = sst [smem:[#allocation13_spill]] %s1726_s25  ;;  %s44_s12 = sadd.s32 1, %s1734_s0 }
  0x17   : > { %2193 = sst [smem:[#allocation14_spill]] %s1730_s26  ;;  %p311_p1 = scmp.ne.s32.totalorder %s1718_s23, %s1714_s22 }
  0x18   : > { %2194 = sst [smem:[#allocation15_spill]] %s1734_s0  ;;  %p312_p2 = scmp.eq.s32.totalorder %s1354_s28, 3 }
  0x19   : > { %2195 = sst [smem:[#allocation16_spill]] %s1738_s27  ;;  %s2235_s30 = smov (%p42_p0, %s41_s30), 0 }
  0x1a   : > { %2196 = sst [smem:[#allocation17_spill]] %s2235_s30  ;;  %s2237_s12 = smov (!%p42_p0, %s44_s12), %s1734_s0 }
  0x1b   : > { %p1856_p3 = por %p312_p2, %p311_p1  ;;  %p317_p4 = scmp.ne.s32.totalorder %s1714_s22, %s1710_s21 }
  0x1c   : > { %p46_p5 = scmp.ge.s32.totalorder %s2237_s12, 2  ;;  %p318_p6 = scmp.eq.s32.totalorder %s1355_s29, 3 }
  0x1d   : > { %s2197_s13 = scalar_select %p1856_p3, 1, 0 }
  0x1e   : > { %p1358_p7 = scmp.ge.s32.totalorder %s1738_s27, 1  ;;  %p400_p8 = scmp.lt.s32.totalorder %s1738_s27, 5 }
  0x1f   : > { %2198 = sst [smem:[#allocation18_spill]] %s2197_s13  ;;  %s2239_s12 = smov (%p46_p5, %s2237_s12), 0 }
  0x20   : > { %2199 = sst [smem:[#allocation19_spill]] %s2239_s12  ;;  %p1866_p9 = por %p318_p6, %p317_p4 }
  0x21   : > { %p401_p10 = pnand %p1358_p7, %p400_p8  ;;  %s298_s15 = ssub.s32 %s1734_s0, %s2239_s12 }
  0x22   : > { %s2200_s14 = scalar_select %p1866_p9, 1, 0 }
  0x23   : > { %s301_s16 = sadd.s32 1, %s1718_s23  ;;  %p299_p11 = scmp.eq.s32.totalorder %s298_s15, 0 }
  0x24   : > { %2201 = sst [smem:[#allocation20_spill]] %s2200_s14  ;;  %404 = sbr.rel (%p401_p10) target bundleno = 2433 (0x981), region = 60 }
  0x25   : > { %s1874_s17 = scalar_select %p299_p11, %s1718_s23, %s301_s16  }
  0x27   : > { %2202 = sst [smem:[#allocation21_spill]] %s1874_s17 }
  0x29   : > { %p466_p12 = scmp.lt.s32.totalorder %s1726_s25, 1  ;;  %p469_p13 = scmp.lt.s32.totalorder %s1722_s24, 1 }
  0x2a   : > { %s2204_s6 = sld [smem:[#allocation26_spill]]  ;;  %s2210_s29 = sand.u32 1, %s1714_s22  }
  0x2b   : > { %s1880_s19 = scalar_select %p466_p12, %s1726_s25, 1 }
  0x2c   : > { %s1883_s20 = scalar_select %p469_p13, %s1722_s24, 1 }
  0x2d   : > { %s2205_s4 = sld [smem:[#allocation24_spill]]  ;;  %s1930_s27 = scalar_lea.vmem [#allocation5], %s2210_s29 }
  0x2e   : > { %s1516_s16 = smul.u32 96, %s1883_s20  ;;  %s1493_s18 = sshll.u32 %s1883_s20, 4 }
  0x2f   : > { %s1517_s12 = smul.u32 6, %s1883_s20  ;;  %s2206_s7 = sld [smem:[#allocation27_spill]] }
  0x30   : > { %s1895_s26 = scalar_lea.vmem %s2204_s6, %s1493_s18  ;;  %s2207_s5 = sld [smem:[#allocation25_spill]] }
  0x31   : > { %s1495_s11 = sshll.u32 %s1883_s20, 5  ;;  %s2208_s8 = sld [smem:[#allocation28_spill]] }
  0x32   : > { %s2209_s10 = sld [smem:[#allocation29_spill]]  ;;  %p1367_p0 = scmp.ne.s32.totalorder %s1722_s24, 0 }
  0x33   : > { %s1900_s14 = scalar_lea.vmem %s2205_s4, %s1516_s16  ;;  %s1366_s16 = sshll.u32 %s1883_s20, 3 }
  0x34   : > { %2211 = sst [smem:[#allocation22_spill]] %s1930_s27  ;;  %504 = sbr.rel (%p1367_p0) target bundleno = 351 (0x15f), region = 64 }
  0x35   : > { %s1905_s21 = scalar_lea.vmem %s2206_s7, %s1493_s18  ;;  %s1368_s1 = sshll.u32 (!%p1367_p0), %s1726_s25, 7 }
  0x36   : > { %s1910_s13 = scalar_lea.vmem %s2207_s5, %s1517_s12  ;;  %s513_s12 = sadd.s32 (!%p1367_p0), 1, %s1368_s1 }
  0x37   : > { %s1916_s30 = scalar_lea.vmem %s2208_s8, %s1495_s11  ;;  %s506_s11 = sld [smem:[#allocation4 + %s1368_s1]] (!%p1367_p0) }
  0x38   : > { %s1926_s18 = scalar_lea.vmem %s2209_s10, %s1366_s16  ;;  %s514_s15 = sld [smem:[#allocation4 + %s513_s12]] (!%p1367_p0) }
  0x39   : > { %s520_s0 = sadd.s32 2, %s1368_s1  ;;  %s527_s23 = sadd.s32 3, %s1368_s1  ;;  %v509_v0 = vld [vmem:[%s2157_s3 + $0x8] sm:$0x1]  ;;  %v517_v1 = vld [vmem:[%s2157_s3 + $0x9] sm:$0x1] }
  0x3a   : > { %s521_s6 = sld [smem:[#allocation4 + %s520_s0]]  ;;  %s534_s5 = sadd.s32 4, %s1368_s1  ;;  %vm511_vm0 = vcmask 253952   ;;  %v524_v3 = vld [vmem:[%s2157_s3 + $0xa] sm:$0x1]  ;;  %vm565_vm1 = vcmask 261120  }
  0x3b   : > { %s528_s17 = sld [smem:[#allocation4 + %s527_s23]]  ;;  %s541_s4 = sadd.s32 5, %s1368_s1  ;;  %v531_v6 = vld [vmem:[%s2157_s3 + $0xb] sm:$0x1]  ;;  %v538_v9 = vld [vmem:[%s2157_s3 + $0xc] sm:$0x1] }
  0x3c   : > { %s1934_s7 = sld [smem:[#allocation4 + %s534_s5]]  ;;  %s548_s8 = sadd.s32 6, %s1368_s1  ;;  %v545_v12 = vld [vmem:[%s2157_s3 + $0xd] sm:$0x1]  ;;  %v552_v15 = vld [vmem:[%s2157_s3 + $0xe] sm:$0x1] }
  0x3d   : > { %s1939_s29 = sld [smem:[#allocation4 + %s541_s4]]  ;;  %s507_s25 = scalar_lea.vmem %s2156_s2, %s506_s11  ;;  %v559_v20 = vld [vmem:[%s2157_s3 + $0xf] sm:$0x1]  ;;  %v1741_v26 = vmov 32.0   ;;  %v1593_v47 = vld [vmem:[%s2157_s3] ss:$0 sm:$0xff] }
  0x3e   : > { %s1947_s0 = sld [smem:[#allocation4 + %s548_s8]]  ;;  %v508_v2 = vld [vmem:[%s507_s25] sm:$0x1]  ;;  %s515_s16 = scalar_lea.vmem %s2156_s2, %s514_s15  ;;  %1595 = vrcp.f32 %v1741_v26  ;;  %v1594_v49 = vld [vmem:[%s2157_s3 + $0x1] ss:$0 sm:$0xff] }
  0x3f   : > { %s555_s24 = sadd.s32 7, %s1368_s1  ;;  %v510_v4 = vadd.f32 %v509_v0, %v508_v2  ;;  %v516_v5 = vld [vmem:[%s515_s16] sm:$0x1] }
  0x40   : > { %s522_s8 = scalar_lea.vmem %s2156_s2, %s521_s6  ;;  %s556_s11 = sld [smem:[#allocation4 + %s555_s24]]  ;;  %v518_v7 = vadd.f32 %v517_v1, %v516_v5 }
  0x41   : > { %v523_v8 = vld [vmem:[%s522_s8] sm:$0x1]  ;;  %s529_s5 = scalar_lea.vmem %s2156_s2, %s528_s17  ;;  %512 = vst.msk [vmem:[#allocation2] sm:$0x1] %vm511_vm0, %v510_v4 }
  0x42   : > { %v525_v10 = vadd.f32 %v524_v3, %v523_v8  ;;  %v530_v11 = vld [vmem:[%s529_s5] sm:$0x1]  ;;  %s536_s4 = scalar_lea.vmem %s2156_s2, %s1934_s7  ;;  %519 = vst.msk [vmem:[#allocation2 + $0x1] sm:$0x1] %vm511_vm0, %v518_v7 }
  0x43   : > { %v532_v13 = vadd.f32 %v531_v6, %v530_v11  ;;  %v537_v14 = vld [vmem:[%s536_s4] sm:$0x1]  ;;  %s543_s22 = scalar_lea.vmem %s2156_s2, %s1939_s29 }
  0x44   : > { %526 = vst.msk [vmem:[#allocation2 + $0x2] sm:$0x1] %vm511_vm0, %v525_v10  ;;  %v539_v16 = vadd.f32 %v538_v9, %v537_v14  ;;  %v544_v17 = vld [vmem:[%s543_s22] sm:$0x1]  ;;  %s550_s15 = scalar_lea.vmem %s2156_s2, %s1947_s0  ;;  %v1596_v27 = vpop.eup %1595 }
  0x45   : > { %533 = vst.msk [vmem:[#allocation2 + $0x3] sm:$0x1] %vm511_vm0, %v532_v13  ;;  %v546_v18 = vadd.f32 %v545_v12, %v544_v17  ;;  %v551_v19 = vld [vmem:[%s550_s15] sm:$0x1]  ;;  %v570_v28 = vmul.f32 32.0, %v1596_v27  ;;  %vm574_vm2 = vweird.f32 %v1596_v27 }
  0x46   : > { %540 = vst.msk [vmem:[#allocation2 + $0x4] sm:$0x1] %vm511_vm0, %v539_v16  ;;  %v553_v21 = vadd.f32 %v552_v15, %v551_v19  ;;  %s557_s23 = scalar_lea.vmem %s2156_s2, %s556_s11 }
  0x47   : > { %547 = vst.msk [vmem:[#allocation2 + $0x5] sm:$0x1] %vm511_vm0, %v546_v18  ;;  %v558_v22 = vld [vmem:[%s557_s23] sm:$0x1]  ;;  %v571_v29 = vsub.f32 1.0, %v570_v28 }
  0x48   : > { %554 = vst.msk [vmem:[#allocation2 + $0x6] sm:$0x1] %vm511_vm0, %v553_v21  ;;  %v560_v23 = vadd.f32 %v559_v20, %v558_v22 }
  0x49   : > { %v572_v30 = vmul.f32 %v1596_v27, %v571_v29 }
  0x4a   : > { %561 = vst.msk [vmem:[#allocation2 + $0x7] sm:$0x1] %vm511_vm0, %v560_v23 }
  0x4b   : > { %v573_v31 = vadd.f32 %v1596_v27, %v572_v30 }
  0x4d   : > { %v575_v32 = vsel %vm574_vm2, %v1596_v27, %v573_v31 }
  0x51   : > { %v562_v24 = vld [vmem:[#allocation2] sm:$0xff] }
  0x52   : > { %v566_v25 = vsel %vm565_vm1, %v562_v24, 0.0 }
  0x53   : > { %567 = vadd.xlane.f32.xlu0 %v566_v25 }
  0xc6   : > { %v568_v33 = vpop.xlane.xlu0 %567 }
  0xc7   : > { %v576_v34 = vmul.f32 %v575_v32, %v568_v33 }
  0xc9   : > { %v577_v35 = vsub.f32 %v562_v24, %v576_v34 }
  0xcb   : > { %v578_v36 = vmul.f32 %v577_v35, %v577_v35 }
  0xcd   : > { %v579_v37 = vsel %vm565_vm1, %v578_v36, 0.0 }
  0xce   : > { %580 = vadd.xlane.f32.xlu0 %v579_v37 }
 0x141   : > { %v581_v38 = vpop.xlane.xlu0 %580 }
 0x142   : > { %v582_v39 = vmul.f32 %v581_v38, %v575_v32 }
 0x144   : > { %v583_v40 = vadd.f32 1e-12, %v582_v39 }
 0x146   : > { %1597 = vrsqrt.f32 %v583_v40  ;;  %vm590_vm4 = vweird.f32 %v583_v40 }
 0x14c   : > { %v1598_v41 = vpop.eup %1597 }
 0x14d   : > { %v585_v42 = vmul.f32 %v1598_v41, %v583_v40  ;;  %vm591_vm3 = vweird.f32 %v1598_v41 }
 0x14e   : > { %vm592_vm5 = vmor %vm590_vm4, %vm591_vm3 }
 0x14f   : > { %v586_v43 = vmul.f32 %v1598_v41, %v585_v42 }
 0x151   : > { %v587_v44 = vmul.f32 0.5, %v586_v43 }
 0x153   : > { %v588_v45 = vsub.f32 1.5, %v587_v44 }
 0x155   : > { %v589_v46 = vmul.f32 %v1598_v41, %v588_v45 }
 0x157   : > { %v593_v48 = vsel %vm592_vm5, %v1598_v41, %v589_v46 }
 0x158   : > { %v594_v50 = vmul.f32 %v593_v48, %v577_v35 }
 0x15a   : > { %v596_v51 = vmul.f32 %v1593_v47, %v594_v50 }
 0x15c   : > { %v598_v52 = vadd.f32 %v1594_v49, %v596_v51 }
 0x15e   : > { %599 = vst.msk [vmem:[#allocation2] sm:$0xff] %vm565_vm1, %v598_v52 }
 0x15f PF: > { %v1497_v53 = vld [vmem:[%s1900_s14 + $0x8] sm:$0xff]  ;;  %v1496_v55 = vld [vmem:[%s1900_s14] sm:$0xff]  ;;  %vm626_vm6 = vcmask 261120   ;;  %vm715_vm7 = vcmask 130048   ;;  %v1506_v8 = vld [vmem:[%s1900_s14 + $0x38] sm:$0xff]  ;;  %s2212_s28 = sld [smem:[#allocation23_spill]] }
 0x160   : > { %v1499_v54 = vld [vmem:[%s1900_s14 + $0x28] sm:$0xff]  ;;  %v1498_v56 = vld [vmem:[%s1900_s14 + $0x20] sm:$0xff]  ;;  %636 = vmatpush.bf16.msra.mxu0 %v1497_v53  ;;  %v1505_v9 = vld [vmem:[%s1900_s14 + $0x30] sm:$0xff]  ;;  %vm740_vm8 = vcmask 64512   ;;  %vm757_vm9 = vcmask 1043456   ;;  %vm1136_vm3 = vcmask 523264  }
 0x161   : > { %671 = vmatpush.bf16.msra.mxu1 %v1499_v54  ;;  %v1600_v59 = vld [vmem:[%s1910_s13 + $0x2] ss:$0 sm:$0xff]  ;;  %v1599_v62 = vld [vmem:[%s1910_s13] ss:$0 sm:$0xff]  ;;  %v1501_v6 = vld [vmem:[%s1900_s14 + $0x48] sm:$0xff] }
 0x162   : > { %706 = vmatpush.bf16.msra.mxu2 %v1501_v6  ;;  %v1500_v7 = vld [vmem:[%s1900_s14 + $0x40] sm:$0xff]  ;;  %v1504_v20 = vld [vmem:[%s1900_s14 + $0x18] sm:$0xff]  ;;  %v1503_v21 = vld [vmem:[%s1900_s14 + $0x10] sm:$0xff] }
 0x163   : > { %v1601_v22 = vld [vmem:[%s1910_s13 + $0x4] ss:$0 sm:$0xff]  ;;  %v1602_v31 = vld [vmem:[%s1910_s13 + $0x3] ss:$0 sm:$0xff]  ;;  %v1508_v41 = vld [vmem:[%s1900_s14 + $0x58] sm:$0xff] }
 0x164   : > { %637 = vmatpush.bf16.msra.mxu0 %v1496_v55  ;;  %v1507_v42 = vld [vmem:[%s1900_s14 + $0x50] sm:$0xff]  ;;  %v1603_v47 = vld [vmem:[%s1910_s13 + $0x1] ss:$0 sm:$0xff]  ;;  %v1604_v51 = vld [vmem:[%s1910_s13 + $0x5] ss:$0 sm:$0xff]  ;;  %s2214_s13 = scalar_lea.vmem %s2163_s9, %s1883_s20  ;;  %s2215_s14 = sld [smem:[#allocation12_spill]] }
 0x165   : > { %v2012_v57 = vld [vmem:[#allocation2] sm:$0xff]  ;;  %672 = vmatpush.bf16.msra.mxu1 %v1498_v56  ;;  %s2213_s17 = scalar_lea.vmem %s2212_s28, %s1880_s19 }
 0x166   : > { %v2016_v58 = vpack.c.bf16 %v2012_v57, %v2012_v57  ;;  %707 = vmatpush.bf16.msra.mxu2 %v1500_v7  ;;  %v602_v10 = vld [vmem:[%s2213_s17] sm:$0x1] }
 0x167   : > { %v603_v11 = vcvt.s32.f32 %v602_v10  ;;  %v1502_v50 = vld [vmem:[%s1895_s26] sm:$0xff] }
 0x168   : > { %1377 = vmatmul.msk.bf16.vlgmr.msra.gmra.mxu0 %vm626_vm6, %v2016_v58  ;;  %1391 = vmatmul.msk.bf16.vlgmr.msra.gmra.mxu1 %vm626_vm6, %v2016_v58 }
 0x169   : > { %1405 = vmatmul.msk.bf16.vlgmr.msra.gmra.mxu2 %vm626_vm6, %v2016_v58  ;;  %v604_v12 = vsub.f32 1.0, %v603_v11  ;;  %805 = vmatpush.bf16.msrb.mxu1 %v1504_v20 }
 0x16a   : > { %840 = vmatpush.bf16.msrb.mxu2 %v1506_v8  ;;  %p1490_p1 = scmp.ne.s32.totalorder %s2215_s14, 1 }
 0x16b   : > { %v2037_v13 = vmul.f32 -1e+09, %v604_v12  ;;  %s2216_s19 = sld [smem:[#allocation22_spill]] (!%p1490_p1) }
 0x16d   : > { %v737_v14 = vperm.slane %v2037_v13, 0  ;;  %806 = vmatpush.bf16.msrb.mxu1 %v1503_v21 }
 0x16e   : > { %841 = vmatpush.bf16.msrb.mxu2 %v1505_v9  ;;  %v1509_v9 = vld [vmem:[%s1895_s26 + $0x8] sm:$0xff] }
 0x172   : > { %957 = vmatpush.bf16.msra.mxu2 %v1509_v9 }
 0x178   : > { %1421 = vmatmul.msk.bf16.vlgmr.msrb.gmra.mxu1 %vm626_vm6, %v2016_v58 }
 0x179   : > { %1435 = vmatmul.msk.bf16.vlgmr.msrb.gmra.mxu2 %vm626_vm6, %v2016_v58 }
 0x1e5   : > { %v639_v60 = vpop.f32.mrf.mxu0  ;;  %v674_v61 = vpop.f32.mrf.mxu1 }
 0x1e6   : > { %v675_v63 = vadd.f32 %v1600_v59, %v674_v61  ;;  %v640_v1 = vadd.f32 %v1599_v62, %v639_v60 }
 0x1e8   : > { %v714_v0 = vpack.c.bf16 %v675_v63, %v675_v63  ;;  %v713_v5 = vpack.c.bf16 %v640_v1, %v640_v1 }
 0x1ea   : > { %v720_v2 = vsel %vm715_vm7, %v714_v0, 0 }
 0x1eb   : > { %729 = vmatpush.bf16.xpose.msra.mxu3 %v720_v2 }
 0x1ec   : > { %v709_v23 = vpop.f32.mrf.mxu2 }
 0x1ed   : > { %v641_v3 = vpop.f32.mrf.mxu0  ;;  %v676_v4 = vpop.f32.mrf.mxu1  ;;  %v710_v24 = vadd.f32 %v1601_v22, %v709_v23 }
 0x1ef   : > { %v753_v25 = vpack.c.bf16 %v710_v24, %v710_v24  ;;  %v1742_v24 = vmov 32.0  }
 0x1f1   : > { %v759_v27 = vsel %vm757_vm9, %v753_v25, 0 }
 0x1f2   : > { %1406 = vmatmul.msk.bf16.vlgmr.msra.gmra.mxu3 %vm715_vm7, %v713_v5  ;;  %768 = vmatpush.bf16.msrb.mxu0 %v759_v27 }
 0x1f3   : > { %875 = vmatpush.bf16.msrb.mxu3 %v1508_v41 }
 0x1f4   : > { %v711_v30 = vpop.f32.mrf.mxu2 }
 0x1f5   : > { %v808_v39 = vpop.f32.mrf.mxu1 }
 0x1f6   : > { %v809_v48 = vadd.f32 %v1603_v47, %v808_v39 }
 0x1f7   : > { %876 = vmatpush.bf16.msrb.mxu3 %v1507_v42 }
 0x1f8   : > { %v882_v49 = vpack.c.bf16 %v809_v48, %v809_v48  ;;  %v1607_v48 = vld [vmem:[%s1926_s18 + $0x3] ss:$0 sm:$0xff] }
 0x1fb   : > { %979 = vmatpush.bf16.msra.mxu3 %v1502_v50 }
 0x1fc   : > { %v843_v33 = vpop.f32.mrf.mxu2 }
 0x1fd   : > { %v844_v35 = vadd.f32 %v1602_v31, %v843_v33  ;;  %v810_v40 = vpop.f32.mrf.mxu1 }
 0x1ff   : > { %v883_v36 = vpack.c.bf16 %v844_v35, %v844_v35  ;;  %v1511_v35 = vld [vmem:[%s1905_s21 + $0x8] sm:$0xff] }
 0x201   : > { %v888_v37 = vsel %vm715_vm7, %v883_v36, 0  ;;  %v1510_v36 = vld [vmem:[%s1905_s21] sm:$0xff] }
 0x202   : > { %897 = vmatpush.bf16.xpose.msra.mxu0 %v888_v37  ;;  %1449 = vmatmul.msk.bf16.vlgmr.msrb.gmra.mxu3 %vm626_vm6, %v2016_v58 }
 0x204   : > { %v845_v38 = vpop.f32.mrf.mxu2 }
 0x275   : > { %v731_v15 = vpop.f32.mrf.mxu3 }
 0x276   : > { %v735_v16 = vmul.f32 0.25, %v731_v15 }
 0x278   : > { %v739_v17 = vadd.f32 %v737_v14, %v735_v16 }
 0x27a   : > { %v741_v18 = vsel %vm740_vm8, %v739_v17, -inf }
 0x27b   : > { %742 = vmax.xlane.f32.xlu0 %v741_v18 }
 0x27d   : > { %v733_v19 = vpop.f32.mrf.mxu3 }
 0x285   : > { %v878_v52 = vpop.f32.mrf.mxu3 }
 0x286   : > { %v879_v54 = vadd.f32 %v1604_v51, %v878_v52 }
 0x288   : > { %v917_v56 = vpack.c.bf16 %v879_v54, %v879_v54 }
 0x28a   : > { %v922_v58 = vsel %vm757_vm9, %v917_v56, 0 }
 0x28b   : > { %931 = vmatpush.bf16.msra.mxu1 %v922_v58 }
 0x28d   : > { %v880_v59 = vpop.f32.mrf.mxu3 }
 0x2ee   : > { %v743_v26 = vpop.xlane.xlu0 %742 }
 0x2ef   : > { %v744_v28 = vsub.f32 %v739_v17, %v743_v26  ;;  %v1605_v17 = vld [vmem:[%s1926_s18] ss:$0 sm:$0xff] }
 0x2f1   : > { %v745_v29 = vmul.f32 1.442695, %v744_v28 }
 0x2f3   : > { %1612 = vpow2.f32 %v745_v29 }
 0x2f9   : > { %v1613_v32 = vpop.eup %1612 }
 0x2fa   : > { %v747_v34 = vsel %vm740_vm8, %v1613_v32, 0.0 }
 0x2fb   : > { %748 = vadd.xlane.f32.xlu0 %v747_v34 }
 0x36e   : > { %v749_v43 = vpop.xlane.xlu0 %748 }
 0x36f   : > { %1614 = vrcp.f32 %v749_v43 }
 0x375   : > { %v1615_v44 = vpop.eup %1614 }
 0x376   : > { %v751_v45 = vmul.f32 %v1615_v44, %v1613_v32 }
 0x378   : > { %v752_v46 = vpack.c.bf16 %v751_v45, %v751_v45 }
 0x37a   : > { %1407 = vmatmul.msk.bf16.vlgmr.msrb.gmra.mxu0 %vm740_vm8, %v752_v46  ;;  %v1606_v46 = vld [vmem:[%s1926_s18 + $0x2] ss:$0 sm:$0xff] }
 0x37b   : > { %1054 = vmatpush.bf16.msrb.mxu0 %v1511_v35 }
 0x37f   : > { %1055 = vmatpush.bf16.msrb.mxu0 %v1510_v36 }
 0x38a   : > { %1450 = vmatmul.msk.bf16.vlgmr.msra.gmra.mxu0 %vm715_vm7, %v882_v49 }
 0x3f7   : > { %v770_v53 = vpop.f32.mrf.mxu0 }
 0x3f8   : > { %v774_v55 = vpack.c.bf16 %v770_v53, %v770_v53  ;;  %v1608_v53 = vld [vmem:[%s2214_s13] ss:$0 sm:$0xff] }
 0x3fa   : > { %1463 = vmatmul.msk.bf16.vlgmr.msra.gmra.mxu3 %vm715_vm7, %v774_v55 }
 0x3ff   : > { %v772_v60 = vpop.f32.mrf.mxu0 }
 0x407   : > { %v899_v61 = vpop.f32.mrf.mxu0 }
 0x408   : > { %v903_v62 = vmul.f32 0.25, %v899_v61 }
 0x40a   : > { %v904_v63 = vadd.f32 %v903_v62, %v737_v14  ;;  %v1515_v62 = vld [vmem:[%s1916_s30 + $0x18] sm:$0xff] }
 0x40b   : > { %1144 = vmatpush.bf16.msrb.mxu1 %v1515_v62 }
 0x40c   : > { %v905_v0 = vsel %vm740_vm8, %v904_v63, -inf }
 0x40d   : > { %906 = vmax.xlane.f32.xlu1 %v905_v0 }
 0x40f   : > { %v901_v1 = vpop.f32.mrf.mxu0 }
 0x47d   : > { %v981_v2 = vpop.f32.mrf.mxu3 }
 0x480   : > { %v907_v3 = vpop.xlane.xlu1 %906 }
 0x481   : > { %v908_v4 = vsub.f32 %v904_v63, %v907_v3  ;;  %v1514_v63 = vld [vmem:[%s1916_s30 + $0x10] sm:$0xff] }
 0x482   : > { %1145 = vmatpush.bf16.msrb.mxu1 %v1514_v63 }
 0x483   : > { %v909_v5 = vmul.f32 1.442695, %v908_v4 }
 0x485   : > { %1616 = vpow2.f32 %v909_v5  ;;  %v983_v6 = vpop.f32.mrf.mxu3 }
 0x48b   : > { %v1617_v7 = vpop.eup %1616 }
 0x48c   : > { %v911_v8 = vsel %vm740_vm8, %v1617_v7, 0.0 }
 0x48d   : > { %912 = vadd.xlane.f32.xlu1 %v911_v8 }
 0x500   : > { %v913_v10 = vpop.xlane.xlu1 %912 }
 0x501   : > { %1618 = vrcp.f32 %v913_v10 }
 0x502   : > { %1620 = vrcp.f32 %v1742_v24 }
 0x507   : > { %v1619_v11 = vpop.eup %1618 }
 0x508   : > { %v915_v12 = vmul.f32 %v1619_v11, %v1617_v7  ;;  %v1621_v25 = vpop.eup %1620  ;;  %v1512_v7 = vld [vmem:[%s1916_s30] sm:$0xff] }
 0x509   : > { %v995_v26 = vmul.f32 32.0, %v1621_v25  ;;  %vm999_vm10 = vweird.f32 %v1621_v25 }
 0x50a   : > { %v916_v13 = vpack.c.bf16 %v915_v12, %v915_v12 }
 0x50b   : > { %v996_v27 = vsub.f32 1.0, %v995_v26 }
 0x50c   : > { %1451 = vmatmul.msk.bf16.vlgmr.msra.gmra.mxu1 %vm740_vm8, %v916_v13 }
 0x50d   : > { %v997_v28 = vmul.f32 %v1621_v25, %v996_v27  ;;  %v1743_v27 = vmov -1.0  }
 0x50f   : > { %v998_v29 = vadd.f32 %v1621_v25, %v997_v28 }
 0x511   : > { %v2075_v30 = vsel %vm999_vm10, %v1621_v25, %v998_v29 }
 0x589   : > { %v933_v14 = vpop.f32.mrf.mxu1 }
 0x58a   : > { %v937_v15 = vpack.c.bf16 %v933_v14, %v933_v14 }
 0x58c   : > { %1458 = vmatmul.msk.bf16.vlgmr.msra.gmra.mxu2 %vm715_vm7, %v937_v15 }
 0x591   : > { %v935_v16 = vpop.f32.mrf.mxu1 }
 0x60f   : > { %v959_v18 = vpop.f32.mrf.mxu2 }
 0x610   : > { %v982_v19 = vadd.f32 %v981_v2, %v959_v18  ;;  %v1513_v2 = vld [vmem:[%s1916_s30 + $0x8] sm:$0xff] }
 0x611   : > { %1146 = vmatpush.bf16.msrb.mxu1 %v1513_v2 }
 0x612   : > { %v987_v20 = vadd.f32 %v1605_v17, %v982_v19 }
 0x614   : > { %v988_v21 = vadd.f32 %v987_v20, %v2012_v57 }
 0x615   : > { %1147 = vmatpush.bf16.msrb.mxu1 %v1512_v7 }
 0x616   : > { %v991_v22 = vsel %vm626_vm6, %v988_v21, 0.0 }
 0x617   : > { %992 = vadd.xlane.f32.xlu2 %v991_v22  ;;  %v961_v23 = vpop.f32.mrf.mxu2 }
 0x68a   : > { %v993_v31 = vpop.xlane.xlu2 %992 }
 0x68b   : > { %v1001_v32 = vmul.f32 %v2075_v30, %v993_v31 }
 0x68d   : > { %v1002_v57 = vsub.f32 %v988_v21, %v1001_v32 }
 0x68f   : > { %v1003_v33 = vmul.f32 %v1002_v57, %v1002_v57 }
 0x691   : > { %v1004_v34 = vsel %vm626_vm6, %v1003_v33, 0.0 }
 0x692   : > { %1005 = vadd.xlane.f32.xlu2 %v1004_v34  ;;  %v1609_v34 = vld [vmem:[%s1926_s18 + $0x1] ss:$0 sm:$0xff] }
 0x705   : > { %v1006_v37 = vpop.xlane.xlu2 %1005 }
 0x706   : > { %v1007_v38 = vmul.f32 %v1006_v37, %v2075_v30 }
 0x708   : > { %v1008_v39 = vadd.f32 1e-12, %v1007_v38 }
 0x70a   : > { %1622 = vrsqrt.f32 %v1008_v39  ;;  %vm1015_vm12 = vweird.f32 %v1008_v39 }
 0x710   : > { %v1623_v40 = vpop.eup %1622 }
 0x711   : > { %v1010_v41 = vmul.f32 %v1623_v40, %v1008_v39  ;;  %vm1016_vm11 = vweird.f32 %v1623_v40 }
 0x712   : > { %vm1017_vm13 = vmor %vm1015_vm12, %vm1016_vm11 }
 0x713   : > { %v1011_v42 = vmul.f32 %v1623_v40, %v1010_v41 }
 0x715   : > { %v1012_v43 = vmul.f32 0.5, %v1011_v42 }
 0x717   : > { %v1013_v44 = vsub.f32 1.5, %v1012_v43 }
 0x719   : > { %v1014_v45 = vmul.f32 %v1623_v40, %v1013_v44 }
 0x71b   : > { %v1018_v47 = vsel %vm1017_vm13, %v1623_v40, %v1014_v45 }
 0x71c   : > { %v1019_v49 = vmul.f32 %v1018_v47, %v1002_v57 }
 0x71e   : > { %v1021_v50 = vmul.f32 %v1606_v46, %v1019_v49 }
 0x720   : > { %v2084_v51 = vadd.f32 %v1607_v48, %v1021_v50 }
 0x722   : > { %v1024_v52 = vpack.c.bf16 %v2084_v51, %v2084_v51 }
 0x724   : > { %1472 = vmatmul.msk.bf16.vlgmr.msrb.gmra.mxu0 %vm626_vm6, %v1024_v52 }
 0x7a1   : > { %v1057_v54 = vpop.f32.mrf.mxu0 }
 0x7a2   : > { %v1058_v55 = vadd.f32 %v1608_v53, %v1057_v54  ;;  %v1610_v54 = vld [vmem:[%s1926_s18 + $0x4] ss:$0 sm:$0xff] }
 0x7a4   : > { %v1062_v56 = vmul.f32 0.70710677, %v1058_v55  ;;  %v1061_v31 = vmul.f32 0.5, %v1058_v55 }
 0x7a6   : > { %v1065_v58 = vand.u32 2147483647, %v1062_v56  ;;  %vm1063_vm2 = vcmp.ge.f32.partialorder %v1062_v56, 0.0  ;;  %v1611_v56 = vld [vmem:[%s1926_s18 + $0x5] ss:$0 sm:$0xff] }
 0x7a7   : > { %v1064_v28 = vsel %vm1063_vm2, 1.0, %v1743_v27 }
 0x7a8   : > { %v1066_v59 = vmul.f32 0.3275911, %v1065_v58  ;;  %v1092_v12 = vsub.f32 0.0, %v1065_v58 }
 0x7a9   : > { %v1059_v60 = vpop.f32.mrf.mxu0 }
 0x7aa   : > { %v1067_v61 = vadd.f32 1.0, %v1066_v59  ;;  %v1093_v15 = vmul.f32 %v1092_v12, %v1065_v58 }
 0x7ac   : > { %1624 = vrcp.f32 %v1067_v61  ;;  %v1079_v4 = vand.u32 2147483648, %v1067_v61  ;;  %v1077_v6 = vand.u32 2147483647, %v1067_v61  ;;  %vm1073_vm15 = vweird.f32 %v1067_v61 }
 0x7ad   : > { %v1094_v18 = vmul.f32 1.442695, %v1093_v15 }
 0x7ae   : > { %v1080_v9 = vor.u32 1.1754944e-38, %v1079_v4  ;;  %vm1078_vm1 = vcmp.eq.f32.partialorder %v1077_v6, 8.507059e+37 }
 0x7af   : > { %1626 = vpow2.f32 %v1094_v18 }
 0x7b2   : > { %v1625_v0 = vpop.eup %1624 }
 0x7b3   : > { %v1069_v1 = vmul.f32 %v1625_v0, %v1067_v61  ;;  %vm1074_vm14 = vweird.f32 %v1625_v0 }
 0x7b4   : > { %vm1075_vm0 = vmor %vm1073_vm15, %vm1074_vm14 }
 0x7b5   : > { %v1070_v3 = vsub.f32 1.0, %v1069_v1  ;;  %v1627_v24 = vpop.eup %1626 }
 0x7b7   : > { %v1071_v5 = vmul.f32 %v1625_v0, %v1070_v3 }
 0x7b9   : > { %v1072_v8 = vadd.f32 %v1625_v0, %v1071_v5 }
 0x7bb   : > { %v1076_v10 = vsel %vm1075_vm0, %v1625_v0, %v1072_v8 }
 0x7bc   : > { %v1081_v11 = vsel %vm1078_vm1, %v1080_v9, %v1076_v10 }
 0x7bd   : > { %v1083_v13 = vmul.f32 1.0614054, %v1081_v11 }
 0x7bf   : > { %v1084_v14 = vadd.f32 -1.4531521, %v1083_v13 }
 0x7c1   : > { %v1085_v16 = vmul.f32 %v1084_v14, %v1081_v11 }
 0x7c3   : > { %v1086_v17 = vadd.f32 1.4214138, %v1085_v16 }
 0x7c5   : > { %v1087_v19 = vmul.f32 %v1086_v17, %v1081_v11 }
 0x7c7   : > { %v1088_v20 = vadd.f32 -0.28449672, %v1087_v19 }
 0x7c9   : > { %v1089_v21 = vmul.f32 %v1088_v20, %v1081_v11 }
 0x7cb   : > { %v1090_v22 = vadd.f32 0.2548296, %v1089_v21 }
 0x7cd   : > { %v1091_v23 = vmul.f32 %v1090_v22, %v1081_v11 }
 0x7cf   : > { %v1096_v25 = vmul.f32 %v1627_v24, %v1091_v23 }
 0x7d1   : > { %v1097_v26 = vsub.f32 1.0, %v1096_v25 }
 0x7d3   : > { %v1098_v29 = vmul.f32 %v1097_v26, %v1064_v28 }
 0x7d5   : > { %v1099_v32 = vadd.f32 1.0, %v1098_v29 }
 0x7d7   : > { %v1100_v57 = vmul.f32 %v1099_v32, %v1061_v31 }
 0x7d9   : > { %v1101_v33 = vpack.c.bf16 %v1100_v57, %v1100_v57 }
 0x7db   : > { %1489 = vmatmul.msk.bf16.vlgmr.msrb.gmra.mxu1 %vm1136_vm3, %v1101_v33 }
 0x858   : > { %v1149_v35 = vpop.f32.mrf.mxu1 }
 0x859   : > { %v1150_v36 = vadd.f32 %v1609_v34, %v1149_v35 }
 0x85b   : > { %v1153_v37 = vadd.f32 %v1150_v36, %v2084_v51 }
 0x85d   : > { %v1156_v38 = vsel %vm626_vm6, %v1153_v37, 0.0 }
 0x85e   : > { %1157 = vadd.xlane.f32.xlu0 %v1156_v38 }
 0x860   : > { %v1151_v39 = vpop.f32.mrf.mxu1 }
 0x8d1   : > { %v1158_v40 = vpop.xlane.xlu0 %1157 }
 0x8d2   : > { %v1159_v41 = vmul.f32 %v1158_v40, %v2075_v30 }
 0x8d4   : > { %v1160_v42 = vsub.f32 %v1153_v37, %v1159_v41 }
 0x8d6   : > { %v1161_v43 = vmul.f32 %v1160_v42, %v1160_v42 }
 0x8d8   : > { %v1162_v44 = vsel %vm626_vm6, %v1161_v43, 0.0 }
 0x8d9   : > { %1163 = vadd.xlane.f32.xlu1 %v1162_v44 }
 0x94c   : > { %v1164_v45 = vpop.xlane.xlu1 %1163 }
 0x94d   : > { %v1165_v46 = vmul.f32 %v1164_v45, %v2075_v30 }
 0x94f   : > { %v1166_v47 = vadd.f32 1e-12, %v1165_v46 }
 0x951   : > { %1628 = vrsqrt.f32 %v1166_v47  ;;  %vm1173_vm5 = vweird.f32 %v1166_v47 }
 0x957   : > { %v1629_v48 = vpop.eup %1628 }
 0x958   : > { %v1168_v49 = vmul.f32 %v1629_v48, %v1166_v47  ;;  %vm1174_vm4 = vweird.f32 %v1629_v48 }
 0x959   : > { %vm1175_vm7 = vmor %vm1173_vm5, %vm1174_vm4 }
 0x95a   : > { %v1169_v50 = vmul.f32 %v1629_v48, %v1168_v49 }
 0x95c   : > { %v1170_v51 = vmul.f32 0.5, %v1169_v50 }
 0x95e   : > { %v1171_v52 = vsub.f32 1.5, %v1170_v51 }
 0x960   : > { %v1172_v53 = vmul.f32 %v1629_v48, %v1171_v52 }
 0x962   : > { %v1176_v55 = vsel %vm1175_vm7, %v1629_v48, %v1172_v53 }
 0x963   : > { %v1177_v58 = vmul.f32 %v1176_v55, %v1160_v42 }
 0x965   : > { %v1179_v59 = vmul.f32 %v1610_v54, %v1177_v58  ;;  %1186 = sbr.rel (%p1490_p1) target bundleno = 2412 (0x96c), region = 68 }
 0x967   : > { %v1181_v60 = vadd.f32 %v1611_v56, %v1179_v59 }
 0x969   : > { %1182 = vst.msk [vmem:[#allocation2] sm:$0xff] %vm626_vm6, %v1181_v60 }
 0x96a   : > { %vm1187_vm8 = vcmask 253952  }
 0x96b   : > { %1188 = vst.msk [vmem:[%s2216_s19] sm:$0x1] %vm1187_vm8, %v1181_v60 }
 0x96c PF: > { %s2217_s20 = sld [smem:[#allocation13_spill]] }
 0x96d   : > { %s2218_s22 = sld [smem:[#allocation30_spill]] }
 0x96e   : > { %s2220_s27 = sld [smem:[#allocation22_spill]] }
 0x96f   : > { %s2221_s7 = sld [smem:[#allocation10_spill]] }
 0x973   : > { %s2219_s8 = smov %s2218_s22  ;;  %s1198_s18 = scalar_lea.hbm %s2218_s22, %s2217_s20 }
 0x974   : > { %s1200_s15 = sshll.u32 %s2220_s27, 4  ;;  %s1202_s12 = sshll.u32 %s1198_s18, 4  ;;  %s1201_s15 = int_to_ptr.vmem [resolvable:$true] %s1200_s15  ;;  %s1203_s12 = int_to_ptr.hbm [resolvable:$true] %s1202_s12 }
 0x975   : > { %s2223_s5 = sand.u32 1, %s2221_s7   ;;  %s1656_s1 = sshra.s32 %s1203_s12, 4  ;;  %s1657_s1 = int_to_ptr.hbm [resolvable:$true] %s1656_s1 }
 0x976   : > { %s1190_s29 = scalar_lea.sflag [#allocation6], %s2223_s5  ;;  %s1658_s23 = scalar_lea.hbm %s1657_s1, 1 }
 0x977   : > { %p1659_p2 = scmp.ne.s32.totalorder %s1657_s1, %s1658_s23  ;;  %s1662_s6 = scalar_lea.hbm %s2219_s8, 2 }
 0x978   : > { %p1663_p6 = scmp.lt.s32.totalorder %s1657_s1, %s2219_s8  ;;  %p1664_p7 = scmp.lt.s32.totalorder %s1662_s6, %s1658_s23 }
 0x979   : > { %p1660_p4 = pnand %p1659_p2, %p1856_p3 }
 0x97a   : > { %p1665_p8 = por %p1664_p7, %p1663_p6 }
 0x97b   : > { %p1661_p5 = pneg %p1660_p4 }
 0x97d   : > { %p1666_p10 = pnand %p1665_p8, %p1661_p5 }
 0x97f   : > { %1669 = shalt.err (!%p1666_p10)
}
 0x980   : > { %1518 = dma.vmem_to_hbm [thread:$0]  (%p1856_p3), %s1201_s15, 16, %s1203_s12, %s1190_s29  }
 0x981 PF: > { %s2224_s24 = sld [smem:[#allocation16_spill]] }
 0x982   : > { %s2225_s28 = sld [smem:[#allocation9_spill]] }
 0x987   : > { %p1524_p11 = scmp.ge.s32.totalorder %s2224_s24, 2 }
 0x988   : > { %s1214_s21 = sand.u32 1, %s2225_s28  }
 0x989   : > { %p1521_p12 = pnand %p1524_p11, %p1866_p9  ;;  %s1215_s26 = scalar_lea.sflag [#allocation6], %s1214_s21 }
 0x98b   : > { %p1522_p13 = pneg %p1521_p12 }
 0x98d   : > { %1705 = dma.done.wait (%p1522_p13), %s1215_s26, 16  }
 0x98e   : > { %1707 = vsyncadd (%p1522_p13), %s1215_s26, 4294967280  ;;  %s32_s27 = sadd.s32 1, %s2224_s24   ;;  %s2227_s21 = sld [smem:[#allocation10_spill]] }
 0x98f   : > { %p29_p0 = scmp.ge.s32.totalorder %s32_s27, 6   ;;  %s2228_s22 = sld [smem:[#allocation11_spill]] }
 0x990   : > { %s2229_s23 = sld [smem:[#allocation21_spill]] }
 0x991   : > { %s2230_s24 = sld [smem:[#allocation14_spill]]  ;;  %31 = sbr.rel (!%p29_p0) target bundleno = 18 (0x12), region = 143 }
 0x992   : > { %s2231_s25 = sld [smem:[#allocation15_spill]] }
 0x993   : > { %s2232_s26 = sld [smem:[#allocation17_spill]] }
 0x994   : > { %s2233_s0 = sld [smem:[#allocation19_spill]] }
 0x996   :  { %1220 = vsyncpa [#allocation6], 1 }
 0x997   :  { %1222 = vsyncpa [#allocation6 + $0x1], 1 }

</bundles_post_ra>
